<compile_context>
chip_gen: v7x
topology: tpu7x:2x2x1
jax: 0.10.0
libtpu: 0.0.40
codegen_flags: <defaults>
</compile_context>

<pallas_src>
import functools

import jax
import jax.numpy as jnp
import numpy as np
from jax import lax
from jax.experimental import pallas as pl
from jax.experimental.pallas import tpu as pltpu

EPS = 1e-5
_PAD_L = 8          # left halo offset in the VMEM scratch (= one f32 sublane tile)


# ----------------------------------------------------------------------------
# Helpers
# ----------------------------------------------------------------------------
def _fold_bn(gamma, beta, mean, var):
    scale = gamma / jnp.sqrt(var + EPS)
    bias = beta - mean * scale
    return scale, bias


def _vmem_limit_bytes():
    """Generation-aware scoped-VMEM limit: raise toward 100 MiB on v5e/v6e,
    stay ~16 MiB under the 64 MiB physical VMEM on v7x."""
    try:
        cap = int(pltpu.get_tpu_info().vmem_capacity_bytes)
    except Exception:
        cap = 128 * 1024 * 1024
    return int(max(32 * 1024 * 1024,
                   min(cap - 16 * 1024 * 1024, 100 * 1024 * 1024)))


def _pick_strip_rows(H, W, Wo, stride, hid, act_bytes, target_bytes):
    """Largest strip height Hs (divisor of H) whose hid-wide activations fit
    the VMEM target, preferring >=2 strips (keeps both v7x cores busy)."""
    w_pad = W + _PAD_L + 2

    def blocks_ok(hs):
        n = H // hs
        if n == 1:
            return True
        # multi-strip blocks must keep the lane (last) block dims 128-aligned
        return (hs % stride == 0 and (hs * W) % 128 == 0
                and ((hs // stride) * Wo) % 128 == 0)

    def fits(hs):
        # pad scratch + h + acc + headroom: ~4 strip-sized hid-wide buffers
        return 4 * (hs + 2) * w_pad * hid * act_bytes <= target_bytes

    cands = [d for d in range(1, H + 1) if H % d == 0 and blocks_ok(d)]
    good = [d for d in cands if fits(d)]
    multi = [d for d in good if H // d >= 2]
    if multi:
        return max(multi)
    if good:
        return max(good)
    return min(cands)


def _build_halo_rows(x_nchw, Hs, n_strips):
    """(N*n_strips, Cin, 2, W): input rows (s*Hs - 1) and (s*Hs + Hs) for each
    strip (zeros at the image border).  Cheap XLA slices of the Cin-wide input."""
    N, Cin, H, W = x_nchw.shape
    zrow = jnp.zeros((N, Cin, 1, W), x_nchw.dtype)
    if n_strips > 1:
        tops = jnp.concatenate([zrow, x_nchw[:, :, Hs - 1:H - 1:Hs, :]], axis=2)
        bots = jnp.concatenate([x_nchw[:, :, Hs::Hs, :], zrow], axis=2)
    else:
        tops, bots = zrow, zrow
    halo = jnp.stack([tops, bots], axis=3)                 # (N, Cin, n, 2, W)
    halo = jnp.transpose(halo, (0, 2, 1, 3, 4))            # (N, n, Cin, 2, W)
    return halo.reshape(N * n_strips, Cin, 2, W)


# ----------------------------------------------------------------------------
# Fused kernel: expand -> depthwise -> project (+ residual), one strip / step
# ----------------------------------------------------------------------------
def _fused_kernel(*refs, W, Wo, Hs, Ho_s, Cin, Chid, Cout, stride, n_strips,
                  use_res, ch_last, mm_dtype, act_dtype):
    if use_res and ch_last:
        (x_ref, xres_ref, xh_ref, w1_ref, s1_ref, b1_ref, dw_ref, s2_ref,
         b2_ref, w3_ref, s3_ref, b3_ref, o_ref, pad_ref) = refs
    else:
        (x_ref, xh_ref, w1_ref, s1_ref, b1_ref, dw_ref, s2_ref,
         b2_ref, w3_ref, s3_ref, b3_ref, o_ref, pad_ref) = refs
        xres_ref = None

    s = pl.program_id(1)

    # ---- 1x1 expand conv (channel matmul) + folded BN + ReLU6 --------------
    w1 = w1_ref[...].astype(mm_dtype)                       # (Cin, Chid)
    s1 = s1_ref[...]                                        # (1, Chid) f32
    b1 = b1_ref[...]

    def expand(x2d):                                        # (Cin, P) -> (P, Chid)
        e = lax.dot_general(x2d.astype(mm_dtype), w1,
                            (((0,), (0,)), ((), ())),
                            preferred_element_type=jnp.float32)
        return jnp.clip(e * s1 + b1, 0.0, 6.0)

    # ---- build the strip's zero halo inside VMEM ----------------------------
    # Only the guard columns are zeroed; halo rows + interior are always fully
    # (re)written below, so nothing stale is ever read across grid steps.
    zcols = jnp.zeros((Hs + 2, 2, Chid), act_dtype)
    pad_ref[:, _PAD_L - 2:_PAD_L, :] = zcols
    pad_ref[:, _PAD_L + W:_PAD_L + W + 2, :] = zcols

    # Neighbour rows (pre-gathered by the wrapper); masked to zero at the image
    # border (the reference zero-pads *after* expand+BN+ReLU6).
    top_ok = (s > 0).astype(jnp.float32)
    bot_ok = (s < n_strips - 1).astype(jnp.float32)
    h_top = expand(xh_ref[0, :, 0, :]) * top_ok             # (W, Chid)
    h_bot = expand(xh_ref[0, :, 1, :]) * bot_ok
    pad_ref[0, _PAD_L:_PAD_L + W, :] = h_top.astype(act_dtype)
    pad_ref[Hs + 1, _PAD_L:_PAD_L + W, :] = h_bot.astype(act_dtype)

    x_strip = x_ref[0]                                      # (Cin, Hs*W)
    h = expand(x_strip)                                     # (Hs*W, Chid)
    pad_ref[1:Hs + 1, _PAD_L:_PAD_L + W, :] = (
        h.reshape(Hs, W, Chid).astype(act_dtype))

    # ---- 3x3 depthwise conv + folded BN + ReLU6 -----------------------------
    taps = dw_ref[...]                                      # (9, Chid): one load
    tap_b = [taps[k:k + 1, :].reshape(1, 1, Chid) for k in range(9)]  # hoisted
    acc = jnp.zeros((Ho_s, Wo, Chid), jnp.float32)
    for kh in range(3):
        for kw in range(3):
            c0 = _PAD_L - 1 + kw
            if stride == 1:
                win = pad_ref[kh:kh + Hs, c0:c0 + W, :]
            else:
                # TODO(synk): strided-window stride=2 path is not exercised by
                # the toy test below (all test configs use stride=1).
                win = pad_ref[pl.ds(kh, Ho_s, stride=stride),
                              pl.ds(c0, Wo, stride=stride), :]
            acc = acc + win.astype(jnp.float32) * tap_b[3 * kh + kw]

    s2 = s2_ref[...].reshape(1, 1, Chid)
    b2 = b2_ref[...].reshape(1, 1, Chid)
    h2 = jnp.clip(acc * s2 + b2, 0.0, 6.0)                  # (Ho_s, Wo, Chid) f32
    h2 = h2.reshape(Ho_s * Wo, Chid).astype(mm_dtype)

    # ---- 1x1 project conv + folded BN (+ residual) --------------------------
    w3 = w3_ref[...].astype(mm_dtype)                       # (Cout, Chid)
    if ch_last:
        out = lax.dot_general(h2, w3, (((1,), (1,)), ((), ())),
                              preferred_element_type=jnp.float32)   # (S, Cout)
        out = out * s3_ref[...] + b3_ref[...]
        if use_res:
            out = out + xres_ref[0].astype(jnp.float32)
        o_ref[...] = out.reshape(1, Ho_s * Wo, Cout).astype(o_ref.dtype)
    else:
        out = lax.dot_general(w3, h2, (((1,), (1,)), ((), ())),
                              preferred_element_type=jnp.float32)   # (Cout, S)
        out = out * s3_ref[...] + b3_ref[...]
        if use_res:
            out = out + x_strip.astype(jnp.float32)
        o_ref[...] = out.reshape(1, Cout, Ho_s * Wo).astype(o_ref.dtype)


# ----------------------------------------------------------------------------
# Parameter setup (deterministic, synthetic)
# ----------------------------------------------------------------------------
def init_params(key, inp, oup, expand_ratio):
    hid = inp * expand_ratio
    ks = jax.random.split(key, 6)

    def bn(k, c):
        k1, k2, k3, k4 = jax.random.split(k, 4)
        gamma = 1.0 + 0.1 * jax.random.normal(k1, (c,), jnp.float32)
        beta = 0.1 * jax.random.normal(k2, (c,), jnp.float32)
        mean = 0.1 * jax.random.normal(k3, (c,), jnp.float32)
        var = 0.5 + jax.nn.softplus(jax.random.normal(k4, (c,), jnp.float32))
        return gamma, beta, mean, var

    return {
        "w1": 0.3 * jax.random.normal(ks[0], (hid, inp), jnp.float32),
        "dw": 0.3 * jax.random.normal(ks[1], (hid, 1, 3, 3), jnp.float32),
        "w3": 0.3 * jax.random.normal(ks[2], (oup, hid), jnp.float32),
        "bn1": bn(ks[3], hid),
        "bn2": bn(ks[4], hid),
        "bn3": bn(ks[5], oup),
    }


# ----------------------------------------------------------------------------
# Pallas wrapper
# ----------------------------------------------------------------------------
def inverted_residual_pallas(x_nchw, params, *, inp, oup, stride=1,
                             expand_ratio=6, matmul_dtype=jnp.float32,
                             act_dtype=jnp.float32):
    # matmul_dtype=bf16 is the perf setting for the 1x1 convs on all TPUs;
    # act_dtype=bf16 additionally halves the scratch/VPU traffic on v6e/v7x.
    hid = inp * expand_ratio
    use_res = (stride == 1) and (inp == oup)

    x_nchw = x_nchw.astype(jnp.float32)
    N, Cin, H, W = x_nchw.shape
    assert Cin == inp
    Ho = (H + 2 - 3) // stride + 1
    Wo = (W + 2 - 3) // stride + 1

    # Per-layer output layout (lane density of the store).
    ch_last = (Ho * Wo) < 128

    act_bytes = jnp.dtype(act_dtype).itemsize
    vmem_limit = _vmem_limit_bytes()
    Hs = H if ch_last else _pick_strip_rows(H, W, Wo, stride, hid, act_bytes,
                                            vmem_limit // 4)
    n_strips = H // Hs
    Ho_s = Ho if n_strips == 1 else Hs // stride
    assert n_strips * Ho_s == Ho

    s1, b1 = _fold_bn(*params["bn1"])
    s2, b2 = _fold_bn(*params["bn2"])
    s3, b3 = _fold_bn(*params["bn3"])

    w1_k = params["w1"].T                     # (Cin, hid)
    dw_k = params["dw"].reshape(hid, 9).T     # (9, hid), row k = 3*kh + kw
    w3_k = params["w3"]                       # (oup, hid)
    s1 = s1.reshape(1, hid); b1 = b1.reshape(1, hid)
    s2 = s2.reshape(1, hid); b2 = b2.reshape(1, hid)
    if ch_last:
        s3 = s3.reshape(1, oup); b3 = b3.reshape(1, oup)
    else:
        s3 = s3.reshape(oup, 1); b3 = b3.reshape(oup, 1)

    # Input passed once, as NCHW (free reshape view, spatial on the lane axis).
    x_flat = x_nchw.reshape(N, Cin, H * W)
    x_halo = _build_halo_rows(x_nchw, Hs, n_strips)

    inputs = [x_flat]
    in_specs = [pl.BlockSpec((1, Cin, Hs * W), lambda n, s: (n, 0, s))]
    if use_res and ch_last:
        # Tiny-spatial layers only: residual pre-transposed so the kernel can
        # add it to the (spatial, oup) output without an in-kernel transpose.
        inputs.append(jnp.transpose(x_flat, (0, 2, 1)))
        in_specs.append(pl.BlockSpec((1, H * W, Cin), lambda n, s: (n, 0, 0)))
    inputs.append(x_halo)
    in_specs.append(
        pl.BlockSpec((1, Cin, 2, W), lambda n, s: (n * n_strips + s, 0, 0, 0)))
    inputs += [w1_k, s1, b1, dw_k, s2, b2, w3_k, s3, b3]
    in_specs += [
        pl.BlockSpec((Cin, hid), lambda n, s: (0, 0)),
        pl.BlockSpec((1, hid), lambda n, s: (0, 0)),
        pl.BlockSpec((1, hid), lambda n, s: (0, 0)),
        pl.BlockSpec((9, hid), lambda n, s: (0, 0)),
        pl.BlockSpec((1, hid), lambda n, s: (0, 0)),
        pl.BlockSpec((1, hid), lambda n, s: (0, 0)),
        pl.BlockSpec((oup, hid), lambda n, s: (0, 0)),
        pl.BlockSpec(s3.shape, lambda n, s: (0, 0)),
        pl.BlockSpec(s3.shape, lambda n, s: (0, 0)),
    ]

    if ch_last:
        out_shape = jax.ShapeDtypeStruct((N, Ho * Wo, oup), jnp.float32)
        out_specs = pl.BlockSpec((1, Ho_s * Wo, oup), lambda n, s: (n, s, 0))
    else:
        out_shape = jax.ShapeDtypeStruct((N, oup, Ho * Wo), jnp.float32)
        out_specs = pl.BlockSpec((1, oup, Ho_s * Wo), lambda n, s: (n, 0, s))

    kernel = functools.partial(
        _fused_kernel, W=W, Wo=Wo, Hs=Hs, Ho_s=Ho_s, Cin=Cin, Chid=hid,
        Cout=oup, stride=stride, n_strips=n_strips, use_res=use_res,
        ch_last=ch_last, mm_dtype=matmul_dtype, act_dtype=act_dtype)

    flops = int(N * (2 * (H * W + 2 * n_strips * W) * Cin * hid
                     + 18 * Ho * Wo * hid
                     + 2 * Ho * Wo * hid * oup))
    bytes_accessed = int(4 * (N * Cin * H * W + N * oup * Ho * Wo
                              + Cin * hid + oup * hid + 15 * hid + 2 * oup))
    cost = pl.CostEstimate(flops=flops, transcendentals=0,
                           bytes_accessed=bytes_accessed)

    out = pl.pallas_call(
        kernel,
        out_shape=out_shape,
        grid=(N, n_strips),
        in_specs=in_specs,
        out_specs=out_specs,
        scratch_shapes=[pltpu.VMEM((Hs + 2, W + _PAD_L + 2, hid), act_dtype)],
        compiler_params=pltpu.CompilerParams(
            dimension_semantics=("parallel", "parallel"),
            vmem_limit_bytes=vmem_limit),
        cost_estimate=cost,
    )(*inputs)

    if ch_last:
        return jnp.transpose(out.reshape(N, Ho, Wo, oup), (0, 3, 1, 2))
    return out.reshape(N, oup, Ho, Wo)     # kernel already emitted channels-first


# ----------------------------------------------------------------------------
# Pure-JAX reference (mirrors the PyTorch forward, NCHW)
# ----------------------------------------------------------------------------
def inverted_residual_ref(x_nchw, params, *, inp, oup, stride=1,
                          expand_ratio=6):
    hid = inp * expand_ratio
    use_res = (stride == 1) and (inp == oup)
    s1, b1 = _fold_bn(*params["bn1"])
    s2, b2 = _fold_bn(*params["bn2"])
    s3, b3 = _fold_bn(*params["bn3"])
    dn = ("NCHW", "OIHW", "NCHW")

    y = lax.conv_general_dilated(x_nchw, params["w1"].reshape(hid, inp, 1, 1),
                                 (1, 1), "VALID", dimension_numbers=dn)
    y = jnp.clip(y * s1.reshape(1, -1, 1, 1) + b1.reshape(1, -1, 1, 1), 0.0, 6.0)
    y = lax.conv_general_dilated(y, params["dw"], (stride, stride),
                                 ((1, 1), (1, 1)), dimension_numbers=dn,
                                 feature_group_count=hid)
    y = jnp.clip(y * s2.reshape(1, -1, 1, 1) + b2.reshape(1, -1, 1, 1), 0.0, 6.0)
    y = lax.conv_general_dilated(y, params["w3"].reshape(oup, hid, 1, 1),
                                 (1, 1), "VALID", dimension_numbers=dn)
    y = y * s3.reshape(1, -1, 1, 1) + b3.reshape(1, -1, 1, 1)
    if use_res:
        y = y + x_nchw
    return y


if __name__ == "__main__":
    key = jax.random.PRNGKey(0)
    kx, kp, kp2, kp3, kx3 = jax.random.split(key, 5)

    # Config A: residual branch active (stride=1, inp==oup), 2 row strips,
    # channels-first output, f32 matmuls (exact comparison).
    inp, oup, stride, expand_ratio = 4, 4, 1, 6
    N, H, W = 2, 16, 16
    x = jax.random.normal(kx, (N, inp, H, W), jnp.float32)   # NCHW like PyTorch
    params = init_params(kp, inp, oup, expand_ratio)
    out = jax.block_until_ready(
        inverted_residual_pallas(x, params, inp=inp, oup=oup, stride=stride,
                                 expand_ratio=expand_ratio))
    ref = jax.block_until_ready(
        inverted_residual_ref(x, params, inp=inp, oup=oup, stride=stride,
                              expand_ratio=expand_ratio))
    assert out.shape == ref.shape == (N, oup, H, W)
    np.testing.assert_allclose(np.asarray(out), np.asarray(ref),
                               rtol=2e-2, atol=2e-2)

    # Config B: no residual (inp != oup); bf16 MXU matmuls with f32 accumulate
    # (the recommended MXU setting on v5e/v6e/v7x).
    oup2 = 8
    params2 = init_params(kp2, inp, oup2, expand_ratio)
    out2 = jax.block_until_ready(
        inverted_residual_pallas(x, params2, inp=inp, oup=oup2, stride=1,
                                 expand_ratio=expand_ratio,
                                 matmul_dtype=jnp.bfloat16))
    ref2 = jax.block_until_ready(
        inverted_residual_ref(x, params2, inp=inp, oup=oup2, stride=1,
                              expand_ratio=expand_ratio))
    assert out2.shape == ref2.shape == (N, oup2, H, W)
    np.testing.assert_allclose(np.asarray(out2), np.asarray(ref2),
                               rtol=1e-1, atol=1e-1)

    # Config C: tiny spatial extent (Ho*Wo < 128) -> channels-last output path
    # (oup on the lane axis) with the pre-transposed residual input.
    inp3 = oup3 = 8
    H3 = W3 = 8
    x3 = jax.random.normal(kx3, (N, inp3, H3, W3), jnp.float32)
    params3 = init_params(kp3, inp3, oup3, expand_ratio)
    out3 = jax.block_until_ready(
        inverted_residual_pallas(x3, params3, inp=inp3, oup=oup3, stride=1,
                                 expand_ratio=expand_ratio))
    ref3 = jax.block_until_ready(
        inverted_residual_ref(x3, params3, inp=inp3, oup=oup3, stride=1,
                              expand_ratio=expand_ratio))
    assert out3.shape == ref3.shape == (N, oup3, H3, W3)
    np.testing.assert_allclose(np.asarray(out3), np.asarray(ref3),
                               rtol=2e-2, atol=2e-2)

    # TODO(synk): BatchNorm training-mode running-stat updates are not
    # implemented (inference-folded scale/bias only), matching eval semantics.
    print("KERNEL_OK")
</pallas_src>

<mosaic_0001>
module attributes {stable_mosaic.version = 11 : i64} {
  func.func @_fused_kernel(%arg0: i32, %arg1: i32, %arg2: memref<1x4x128xf32, #tpu.memory_space<vmem>>, %arg3: memref<1x4x2x16xf32, #tpu.memory_space<vmem>>, %arg4: memref<4x24xf32, #tpu.memory_space<vmem>>, %arg5: memref<1x24xf32, #tpu.memory_space<vmem>>, %arg6: memref<1x24xf32, #tpu.memory_space<vmem>>, %arg7: memref<9x24xf32, #tpu.memory_space<vmem>>, %arg8: memref<1x24xf32, #tpu.memory_space<vmem>>, %arg9: memref<1x24xf32, #tpu.memory_space<vmem>>, %arg10: memref<4x24xf32, #tpu.memory_space<vmem>>, %arg11: memref<4x1xf32, #tpu.memory_space<vmem>>, %arg12: memref<4x1xf32, #tpu.memory_space<vmem>>, %arg13: memref<1x4x128xf32, #tpu.memory_space<vmem>>, %arg14: memref<10x26x24xf32, #tpu.memory_space<vmem>>) attributes {dimension_semantics = [#tpu.dimension_semantics<parallel>, #tpu.dimension_semantics<parallel>], iteration_bounds = array<i64: 2, 2>, scalar_prefetch = 0 : i64, scratch_operands = 1 : i64, tpu.core_type = #tpu.core_type<tc>, window_params = [{transform_indices = @transform_0, window_bounds = array<i64: 1, 4, 128>}, {transform_indices = @transform_1, window_bounds = array<i64: 1, 4, 2, 16>}, {pipeline_mode = #tpu.pipeline_mode<synchronous>, transform_indices = @transform_2, window_bounds = array<i64: 4, 24>}, {pipeline_mode = #tpu.pipeline_mode<synchronous>, transform_indices = @transform_3, window_bounds = array<i64: 1, 24>}, {pipeline_mode = #tpu.pipeline_mode<synchronous>, transform_indices = @transform_4, window_bounds = array<i64: 1, 24>}, {pipeline_mode = #tpu.pipeline_mode<synchronous>, transform_indices = @transform_5, window_bounds = array<i64: 9, 24>}, {pipeline_mode = #tpu.pipeline_mode<synchronous>, transform_indices = @transform_6, window_bounds = array<i64: 1, 24>}, {pipeline_mode = #tpu.pipeline_mode<synchronous>, transform_indices = @transform_7, window_bounds = array<i64: 1, 24>}, {pipeline_mode = #tpu.pipeline_mode<synchronous>, transform_indices = @transform_8, window_bounds = array<i64: 4, 24>}, {pipeline_mode = #tpu.pipeline_mode<synchronous>, transform_indices = @transform_9, window_bounds = array<i64: 4, 1>}, {pipeline_mode = #tpu.pipeline_mode<synchronous>, transform_indices = @transform_10, window_bounds = array<i64: 4, 1>}, {transform_indices = @transform_11, window_bounds = array<i64: 1, 4, 128>}]} {
    %c0 = arith.constant 0 : index
    %c0_0 = arith.constant 0 : index
    %0 = vector.load %arg4[%c0, %c0_0] : memref<4x24xf32, #tpu.memory_space<vmem>>, vector<4x24xf32>
    %c0_1 = arith.constant 0 : index
    %c0_2 = arith.constant 0 : index
    %1 = vector.load %arg5[%c0_1, %c0_2] : memref<1x24xf32, #tpu.memory_space<vmem>>, vector<1x24xf32>
    %c0_3 = arith.constant 0 : index
    %c0_4 = arith.constant 0 : index
    %2 = vector.load %arg6[%c0_3, %c0_4] : memref<1x24xf32, #tpu.memory_space<vmem>>, vector<1x24xf32>
    %cst = arith.constant 0.000000e+00 : f32
    %3 = vector.broadcast %cst : f32 to vector<10x2x24xf32>
    %c0_5 = arith.constant 0 : index
    %c6 = arith.constant 6 : index
    %c0_6 = arith.constant 0 : index
    %4 = vector.load %arg14[%c0_5, %c6, %c0_6] : memref<10x26x24xf32, #tpu.memory_space<vmem>>, vector<10x2x24xf32>
    tpu.vector_store %arg14[%c0_5, %c6, %c0_6], %3 {strides = array<i32>} : memref<10x26x24xf32, #tpu.memory_space<vmem>>, vector<10x2x24xf32>,
    %c0_7 = arith.constant 0 : index
    %c24 = arith.constant 24 : index
    %c0_8 = arith.constant 0 : index
    %5 = vector.load %arg14[%c0_7, %c24, %c0_8] : memref<10x26x24xf32, #tpu.memory_space<vmem>>, vector<10x2x24xf32>
    tpu.vector_store %arg14[%c0_7, %c24, %c0_8], %3 {strides = array<i32>} : memref<10x26x24xf32, #tpu.memory_space<vmem>>, vector<10x2x24xf32>,
    %c0_i32 = arith.constant 0 : i32
    %6 = arith.cmpi sgt, %arg1, %c0_i32 : i32
    %7 = arith.extui %6 : i1 to i32
    %8 = arith.sitofp %7 : i32 to f32
    %c1_i32 = arith.constant 1 : i32
    %9 = arith.cmpi slt, %arg1, %c1_i32 : i32
    %10 = arith.extui %9 : i1 to i32
    %11 = arith.sitofp %10 : i32 to f32
    %c0_9 = arith.constant 0 : index
    %c0_10 = arith.constant 0 : index
    %c0_11 = arith.constant 0 : index
    %c0_12 = arith.constant 0 : index
    %12 = vector.load %arg3[%c0_9, %c0_10, %c0_11, %c0_12] : memref<1x4x2x16xf32, #tpu.memory_space<vmem>>, vector<1x4x1x16xf32>
    %13 = vector.shape_cast %12 : vector<1x4x1x16xf32> to vector<4x16xf32>
    %cst_13 = arith.constant dense<0.000000e+00> : vector<16x24xf32>
    %14 = tpu.matmul %13, %0, %cst_13 {dimension_numbers = #tpu.dot_dimension_numbers<[0], [0], [1], [1], [0, 1, 1, 1], [], []>} : vector<4x16xf32>, vector<4x24xf32>, vector<16x24xf32> -> vector<16x24xf32>
    %15 = vector.broadcast %1 : vector<1x24xf32> to vector<16x24xf32>
    %16 = arith.mulf %14, %15 : vector<16x24xf32>
    %17 = vector.broadcast %2 : vector<1x24xf32> to vector<16x24xf32>
    %18 = arith.addf %16, %17 : vector<16x24xf32>
    %cst_14 = arith.constant 0.000000e+00 : f32
    %cst_15 = arith.constant 6.000000e+00 : f32
    %19 = vector.broadcast %cst_14 : f32 to vector<16x24xf32>
    %20 = arith.maximumf %19, %18 : vector<16x24xf32>
    %21 = vector.broadcast %cst_15 : f32 to vector<16x24xf32>
    %22 = arith.minimumf %21, %20 : vector<16x24xf32>
    %23 = vector.broadcast %8 : f32 to vector<16x24xf32>
    %24 = arith.mulf %22, %23 : vector<16x24xf32>
    %c0_16 = arith.constant 0 : index
    %c0_17 = arith.constant 0 : index
    %c1 = arith.constant 1 : index
    %c0_18 = arith.constant 0 : index
    %25 = vector.load %arg3[%c0_16, %c0_17, %c1, %c0_18] : memref<1x4x2x16xf32, #tpu.memory_space<vmem>>, vector<1x4x1x16xf32>
    %26 = vector.shape_cast %25 : vector<1x4x1x16xf32> to vector<4x16xf32>
    %cst_19 = arith.constant dense<0.000000e+00> : vector<16x24xf32>
    %27 = tpu.matmul %26, %0, %cst_19 {dimension_numbers = #tpu.dot_dimension_numbers<[0], [0], [1], [1], [0, 1, 1, 1], [], []>} : vector<4x16xf32>, vector<4x24xf32>, vector<16x24xf32> -> vector<16x24xf32>
    %28 = vector.broadcast %1 : vector<1x24xf32> to vector<16x24xf32>
    %29 = arith.mulf %27, %28 : vector<16x24xf32>
    %30 = vector.broadcast %2 : vector<1x24xf32> to vector<16x24xf32>
    %31 = arith.addf %29, %30 : vector<16x24xf32>
    %cst_20 = arith.constant 0.000000e+00 : f32
    %cst_21 = arith.constant 6.000000e+00 : f32
    %32 = vector.broadcast %cst_20 : f32 to vector<16x24xf32>
    %33 = arith.maximumf %32, %31 : vector<16x24xf32>
    %34 = vector.broadcast %cst_21 : f32 to vector<16x24xf32>
    %35 = arith.minimumf %34, %33 : vector<16x24xf32>
    %36 = vector.broadcast %11 : f32 to vector<16x24xf32>
    %37 = arith.mulf %35, %36 : vector<16x24xf32>
    %c0_22 = arith.constant 0 : index
    %c8 = arith.constant 8 : index
    %c0_23 = arith.constant 0 : index
    %38 = vector.load %arg14[%c0_22, %c8, %c0_23] : memref<10x26x24xf32, #tpu.memory_space<vmem>>, vector<1x16x24xf32>
    %39 = vector.shape_cast %38 : vector<1x16x24xf32> to vector<16x24xf32>
    %40 = vector.shape_cast %24 : vector<16x24xf32> to vector<1x16x24xf32>
    tpu.vector_store %arg14[%c0_22, %c8, %c0_23], %40 {strides = array<i32>} : memref<10x26x24xf32, #tpu.memory_space<vmem>>, vector<1x16x24xf32>,
    %c9 = arith.constant 9 : index
    %c8_24 = arith.constant 8 : index
    %c0_25 = arith.constant 0 : index
    %41 = vector.load %arg14[%c9, %c8_24, %c0_25] : memref<10x26x24xf32, #tpu.memory_space<vmem>>, vector<1x16x24xf32>
    %42 = vector.shape_cast %41 : vector<1x16x24xf32> to vector<16x24xf32>
    %43 = vector.shape_cast %37 : vector<16x24xf32> to vector<1x16x24xf32>
    tpu.vector_store %arg14[%c9, %c8_24, %c0_25], %43 {strides = array<i32>} : memref<10x26x24xf32, #tpu.memory_space<vmem>>, vector<1x16x24xf32>,
    %c0_26 = arith.constant 0 : index
    %c0_27 = arith.constant 0 : index
    %c0_28 = arith.constant 0 : index
    %44 = vector.load %arg2[%c0_26, %c0_27, %c0_28] : memref<1x4x128xf32, #tpu.memory_space<vmem>>, vector<1x4x128xf32>
    %45 = vector.shape_cast %44 : vector<1x4x128xf32> to vector<4x128xf32>
    %cst_29 = arith.constant dense<0.000000e+00> : vector<128x24xf32>
    %46 = tpu.matmul %45, %0, %cst_29 {dimension_numbers = #tpu.dot_dimension_numbers<[0], [0], [1], [1], [0, 1, 1, 1], [], []>} : vector<4x128xf32>, vector<4x24xf32>, vector<128x24xf32> -> vector<128x24xf32>
    %47 = vector.broadcast %1 : vector<1x24xf32> to vector<128x24xf32>
    %48 = arith.mulf %46, %47 : vector<128x24xf32>
    %49 = vector.broadcast %2 : vector<1x24xf32> to vector<128x24xf32>
    %50 = arith.addf %48, %49 : vector<128x24xf32>
    %cst_30 = arith.constant 0.000000e+00 : f32
    %cst_31 = arith.constant 6.000000e+00 : f32
    %51 = vector.broadcast %cst_30 : f32 to vector<128x24xf32>
    %52 = arith.maximumf %51, %50 : vector<128x24xf32>
    %53 = vector.broadcast %cst_31 : f32 to vector<128x24xf32>
    %54 = arith.minimumf %53, %52 : vector<128x24xf32>
    %55 = vector.shape_cast %54 : vector<128x24xf32> to vector<8x16x24xf32>
    %c1_32 = arith.constant 1 : index
    %c8_33 = arith.constant 8 : index
    %c0_34 = arith.constant 0 : index
    %56 = vector.load %arg14[%c1_32, %c8_33, %c0_34] : memref<10x26x24xf32, #tpu.memory_space<vmem>>, vector<8x16x24xf32>
    tpu.vector_store %arg14[%c1_32, %c8_33, %c0_34], %55 {strides = array<i32>} : memref<10x26x24xf32, #tpu.memory_space<vmem>>, vector<8x16x24xf32>,
    %c0_35 = arith.constant 0 : index
    %c0_36 = arith.constant 0 : index
    %57 = vector.load %arg7[%c0_35, %c0_36] : memref<9x24xf32, #tpu.memory_space<vmem>>, vector<9x24xf32>
    %58 = vector.extract_strided_slice %57 {offsets = [0, 0], sizes = [1, 24], strides = [1, 1]} : vector<9x24xf32> to vector<1x24xf32>
    %59 = vector.shape_cast %58 : vector<1x24xf32> to vector<1x1x24xf32>
    %60 = vector.extract_strided_slice %57 {offsets = [1, 0], sizes = [1, 24], strides = [1, 1]} : vector<9x24xf32> to vector<1x24xf32>
    %61 = vector.shape_cast %60 : vector<1x24xf32> to vector<1x1x24xf32>
    %62 = vector.extract_strided_slice %57 {offsets = [2, 0], sizes = [1, 24], strides = [1, 1]} : vector<9x24xf32> to vector<1x24xf32>
    %63 = vector.shape_cast %62 : vector<1x24xf32> to vector<1x1x24xf32>
    %64 = vector.extract_strided_slice %57 {offsets = [3, 0], sizes = [1, 24], strides = [1, 1]} : vector<9x24xf32> to vector<1x24xf32>
    %65 = vector.shape_cast %64 : vector<1x24xf32> to vector<1x1x24xf32>
    %66 = vector.extract_strided_slice %57 {offsets = [4, 0], sizes = [1, 24], strides = [1, 1]} : vector<9x24xf32> to vector<1x24xf32>
    %67 = vector.shape_cast %66 : vector<1x24xf32> to vector<1x1x24xf32>
    %68 = vector.extract_strided_slice %57 {offsets = [5, 0], sizes = [1, 24], strides = [1, 1]} : vector<9x24xf32> to vector<1x24xf32>
    %69 = vector.shape_cast %68 : vector<1x24xf32> to vector<1x1x24xf32>
    %70 = vector.extract_strided_slice %57 {offsets = [6, 0], sizes = [1, 24], strides = [1, 1]} : vector<9x24xf32> to vector<1x24xf32>
    %71 = vector.shape_cast %70 : vector<1x24xf32> to vector<1x1x24xf32>
    %72 = vector.extract_strided_slice %57 {offsets = [7, 0], sizes = [1, 24], strides = [1, 1]} : vector<9x24xf32> to vector<1x24xf32>
    %73 = vector.shape_cast %72 : vector<1x24xf32> to vector<1x1x24xf32>
    %74 = vector.extract_strided_slice %57 {offsets = [8, 0], sizes = [1, 24], strides = [1, 1]} : vector<9x24xf32> to vector<1x24xf32>
    %75 = vector.shape_cast %74 : vector<1x24xf32> to vector<1x1x24xf32>
    %cst_37 = arith.constant 0.000000e+00 : f32
    %76 = vector.broadcast %cst_37 : f32 to vector<8x16x24xf32>
    %c0_38 = arith.constant 0 : index
    %c7 = arith.constant 7 : index
    %c0_39 = arith.constant 0 : index
    %77 = vector.load %arg14[%c0_38, %c7, %c0_39] : memref<10x26x24xf32, #tpu.memory_space<vmem>>, vector<8x16x24xf32>
    %78 = vector.broadcast %59 : vector<1x1x24xf32> to vector<8x16x24xf32>
    %79 = arith.mulf %77, %78 : vector<8x16x24xf32>
    %80 = arith.addf %76, %79 : vector<8x16x24xf32>
    %c0_40 = arith.constant 0 : index
    %c8_41 = arith.constant 8 : index
    %c0_42 = arith.constant 0 : index
    %81 = vector.load %arg14[%c0_40, %c8_41, %c0_42] : memref<10x26x24xf32, #tpu.memory_space<vmem>>, vector<8x16x24xf32>
    %82 = vector.broadcast %61 : vector<1x1x24xf32> to vector<8x16x24xf32>
    %83 = arith.mulf %81, %82 : vector<8x16x24xf32>
    %84 = arith.addf %80, %83 : vector<8x16x24xf32>
    %c0_43 = arith.constant 0 : index
    %c9_44 = arith.constant 9 : index
    %c0_45 = arith.constant 0 : index
    %85 = vector.load %arg14[%c0_43, %c9_44, %c0_45] : memref<10x26x24xf32, #tpu.memory_space<vmem>>, vector<8x16x24xf32>
    %86 = vector.broadcast %63 : vector<1x1x24xf32> to vector<8x16x24xf32>
    %87 = arith.mulf %85, %86 : vector<8x16x24xf32>
    %88 = arith.addf %84, %87 : vector<8x16x24xf32>
    %c1_46 = arith.constant 1 : index
    %c7_47 = arith.constant 7 : index
    %c0_48 = arith.constant 0 : index
    %89 = vector.load %arg14[%c1_46, %c7_47, %c0_48] : memref<10x26x24xf32, #tpu.memory_space<vmem>>, vector<8x16x24xf32>
    %90 = vector.broadcast %65 : vector<1x1x24xf32> to vector<8x16x24xf32>
    %91 = arith.mulf %89, %90 : vector<8x16x24xf32>
    %92 = arith.addf %88, %91 : vector<8x16x24xf32>
    %c1_49 = arith.constant 1 : index
    %c8_50 = arith.constant 8 : index
    %c0_51 = arith.constant 0 : index
    %93 = vector.load %arg14[%c1_49, %c8_50, %c0_51] : memref<10x26x24xf32, #tpu.memory_space<vmem>>, vector<8x16x24xf32>
    %94 = vector.broadcast %67 : vector<1x1x24xf32> to vector<8x16x24xf32>
    %95 = arith.mulf %93, %94 : vector<8x16x24xf32>
    %96 = arith.addf %92, %95 : vector<8x16x24xf32>
    %c1_52 = arith.constant 1 : index
    %c9_53 = arith.constant 9 : index
    %c0_54 = arith.constant 0 : index
    %97 = vector.load %arg14[%c1_52, %c9_53, %c0_54] : memref<10x26x24xf32, #tpu.memory_space<vmem>>, vector<8x16x24xf32>
    %98 = vector.broadcast %69 : vector<1x1x24xf32> to vector<8x16x24xf32>
    %99 = arith.mulf %97, %98 : vector<8x16x24xf32>
    %100 = arith.addf %96, %99 : vector<8x16x24xf32>
    %c2 = arith.constant 2 : index
    %c7_55 = arith.constant 7 : index
    %c0_56 = arith.constant 0 : index
    %101 = vector.load %arg14[%c2, %c7_55, %c0_56] : memref<10x26x24xf32, #tpu.memory_space<vmem>>, vector<8x16x24xf32>
    %102 = vector.broadcast %71 : vector<1x1x24xf32> to vector<8x16x24xf32>
    %103 = arith.mulf %101, %102 : vector<8x16x24xf32>
    %104 = arith.addf %100, %103 : vector<8x16x24xf32>
    %c2_57 = arith.constant 2 : index
    %c8_58 = arith.constant 8 : index
    %c0_59 = arith.constant 0 : index
    %105 = vector.load %arg14[%c2_57, %c8_58, %c0_59] : memref<10x26x24xf32, #tpu.memory_space<vmem>>, vector<8x16x24xf32>
    %106 = vector.broadcast %73 : vector<1x1x24xf32> to vector<8x16x24xf32>
    %107 = arith.mulf %105, %106 : vector<8x16x24xf32>
    %108 = arith.addf %104, %107 : vector<8x16x24xf32>
    %c2_60 = arith.constant 2 : index
    %c9_61 = arith.constant 9 : index
    %c0_62 = arith.constant 0 : index
    %109 = vector.load %arg14[%c2_60, %c9_61, %c0_62] : memref<10x26x24xf32, #tpu.memory_space<vmem>>, vector<8x16x24xf32>
    %110 = vector.broadcast %75 : vector<1x1x24xf32> to vector<8x16x24xf32>
    %111 = arith.mulf %109, %110 : vector<8x16x24xf32>
    %112 = arith.addf %108, %111 : vector<8x16x24xf32>
    %c0_63 = arith.constant 0 : index
    %c0_64 = arith.constant 0 : index
    %113 = vector.load %arg8[%c0_63, %c0_64] : memref<1x24xf32, #tpu.memory_space<vmem>>, vector<1x24xf32>
    %114 = vector.shape_cast %113 : vector<1x24xf32> to vector<1x1x24xf32>
    %c0_65 = arith.constant 0 : index
    %c0_66 = arith.constant 0 : index
    %115 = vector.load %arg9[%c0_65, %c0_66] : memref<1x24xf32, #tpu.memory_space<vmem>>, vector<1x24xf32>
    %116 = vector.shape_cast %115 : vector<1x24xf32> to vector<1x1x24xf32>
    %117 = vector.broadcast %114 : vector<1x1x24xf32> to vector<8x16x24xf32>
    %118 = arith.mulf %112, %117 : vector<8x16x24xf32>
    %119 = vector.broadcast %116 : vector<1x1x24xf32> to vector<8x16x24xf32>
    %120 = arith.addf %118, %119 : vector<8x16x24xf32>
    %cst_67 = arith.constant 0.000000e+00 : f32
    %cst_68 = arith.constant 6.000000e+00 : f32
    %121 = vector.broadcast %cst_67 : f32 to vector<8x16x24xf32>
    %122 = arith.maximumf %121, %120 : vector<8x16x24xf32>
    %123 = vector.broadcast %cst_68 : f32 to vector<8x16x24xf32>
    %124 = arith.minimumf %123, %122 : vector<8x16x24xf32>
    %125 = vector.shape_cast %124 : vector<8x16x24xf32> to vector<128x24xf32>
    %c0_69 = arith.constant 0 : index
    %c0_70 = arith.constant 0 : index
    %126 = vector.load %arg10[%c0_69, %c0_70] : memref<4x24xf32, #tpu.memory_space<vmem>>, vector<4x24xf32>
    %cst_71 = arith.constant dense<0.000000e+00> : vector<4x128xf32>
    %127 = tpu.matmul %126, %125, %cst_71 {dimension_numbers = #tpu.dot_dimension_numbers<[1], [1], [0], [0], [0, 0, 1, 0], [], []>} : vector<4x24xf32>, vector<128x24xf32>, vector<4x128xf32> -> vector<4x128xf32>
    %c0_72 = arith.constant 0 : index
    %c0_73 = arith.constant 0 : index
    %128 = vector.load %arg11[%c0_72, %c0_73] : memref<4x1xf32, #tpu.memory_space<vmem>>, vector<4x1xf32>
    %129 = vector.broadcast %128 : vector<4x1xf32> to vector<4x128xf32>
    %130 = arith.mulf %127, %129 : vector<4x128xf32>
    %c0_74 = arith.constant 0 : index
    %c0_75 = arith.constant 0 : index
    %131 = vector.load %arg12[%c0_74, %c0_75] : memref<4x1xf32, #tpu.memory_space<vmem>>, vector<4x1xf32>
    %132 = vector.broadcast %131 : vector<4x1xf32> to vector<4x128xf32>
    %133 = arith.addf %130, %132 : vector<4x128xf32>
    %134 = arith.addf %133, %45 : vector<4x128xf32>
    %135 = vector.shape_cast %134 : vector<4x128xf32> to vector<1x4x128xf32>
    %c0_76 = arith.constant 0 : index
    %c0_77 = arith.constant 0 : index
    %c0_78 = arith.constant 0 : index
    %136 = vector.load %arg13[%c0_76, %c0_77, %c0_78] : memref<1x4x128xf32, #tpu.memory_space<vmem>>, vector<1x4x128xf32>
    tpu.vector_store %arg13[%c0_76, %c0_77, %c0_78], %135 {strides = array<i32>} : memref<1x4x128xf32, #tpu.memory_space<vmem>>, vector<1x4x128xf32>,
    return
  }
  func.func @transform_0(%arg0: i32, %arg1: i32) -> (i32, i32, i32) {
    %c0_i32 = arith.constant 0 : i32
    %c0_i32_0 = arith.constant 0 : i32
    return %arg0, %c0_i32, %arg1 : i32, i32, i32
  }
  func.func @transform_1(%arg0: i32, %arg1: i32) -> (i32, i32, i32, i32) {
    %c2_i32 = arith.constant 2 : i32
    %0 = arith.muli %arg0, %c2_i32 : i32
    %1 = arith.addi %0, %arg1 : i32
    %c0_i32 = arith.constant 0 : i32
    %c0_i32_0 = arith.constant 0 : i32
    %c0_i32_1 = arith.constant 0 : i32
    %c0_i32_2 = arith.constant 0 : i32
    return %1, %c0_i32, %c0_i32_0, %c0_i32_1 : i32, i32, i32, i32
  }
  func.func @transform_2(%arg0: i32, %arg1: i32) -> (i32, i32) {
    %c0_i32 = arith.constant 0 : i32
    %c0_i32_0 = arith.constant 0 : i32
    %c0_i32_1 = arith.constant 0 : i32
    return %c0_i32, %c0_i32_0 : i32, i32
  }
  func.func @transform_3(%arg0: i32, %arg1: i32) -> (i32, i32) {
    %c0_i32 = arith.constant 0 : i32
    %c0_i32_0 = arith.constant 0 : i32
    %c0_i32_1 = arith.constant 0 : i32
    return %c0_i32, %c0_i32_0 : i32, i32
  }
  func.func @transform_4(%arg0: i32, %arg1: i32) -> (i32, i32) {
    %c0_i32 = arith.constant 0 : i32
    %c0_i32_0 = arith.constant 0 : i32
    %c0_i32_1 = arith.constant 0 : i32
    return %c0_i32, %c0_i32_0 : i32, i32
  }
  func.func @transform_5(%arg0: i32, %arg1: i32) -> (i32, i32) {
    %c0_i32 = arith.constant 0 : i32
    %c0_i32_0 = arith.constant 0 : i32
    %c0_i32_1 = arith.constant 0 : i32
    return %c0_i32, %c0_i32_0 : i32, i32
  }
  func.func @transform_6(%arg0: i32, %arg1: i32) -> (i32, i32) {
    %c0_i32 = arith.constant 0 : i32
    %c0_i32_0 = arith.constant 0 : i32
    %c0_i32_1 = arith.constant 0 : i32
    return %c0_i32, %c0_i32_0 : i32, i32
  }
  func.func @transform_7(%arg0: i32, %arg1: i32) -> (i32, i32) {
    %c0_i32 = arith.constant 0 : i32
    %c0_i32_0 = arith.constant 0 : i32
    %c0_i32_1 = arith.constant 0 : i32
    return %c0_i32, %c0_i32_0 : i32, i32
  }
  func.func @transform_8(%arg0: i32, %arg1: i32) -> (i32, i32) {
    %c0_i32 = arith.constant 0 : i32
    %c0_i32_0 = arith.constant 0 : i32
    %c0_i32_1 = arith.constant 0 : i32
    return %c0_i32, %c0_i32_0 : i32, i32
  }
  func.func @transform_9(%arg0: i32, %arg1: i32) -> (i32, i32) {
    %c0_i32 = arith.constant 0 : i32
    %c0_i32_0 = arith.constant 0 : i32
    %c0_i32_1 = arith.constant 0 : i32
    return %c0_i32, %c0_i32_0 : i32, i32
  }
  func.func @transform_10(%arg0: i32, %arg1: i32) -> (i32, i32) {
    %c0_i32 = arith.constant 0 : i32
    %c0_i32_0 = arith.constant 0 : i32
    %c0_i32_1 = arith.constant 0 : i32
    return %c0_i32, %c0_i32_0 : i32, i32
  }
  func.func @transform_11(%arg0: i32, %arg1: i32) -> (i32, i32, i32) {
    %c0_i32 = arith.constant 0 : i32
    %c0_i32_0 = arith.constant 0 : i32
    return %arg0, %c0_i32, %arg1 : i32, i32, i32
  }
}

</mosaic_0001>

<bundles_post_ra>
// kernel: tpu_custom_call.1
= control target key start
LH: loop header
LB: loop body
LE: loop exit
PB: predicated region body
PF: predicated region fallthrough
CT: control target
= control target key end

     0   :  { %s4191_s0 = inlined_call_operand.hbm [shape: f32[2,4,256], index: 0, kind: input, shape index: {}]   ;;  %s4192_s1 = inlined_call_operand.hbm [shape: f32[4,4,2,16], index: 1, kind: input, shape index: {}]   ;;  %s4193_s2 = inlined_call_operand.hbm [shape: f32[4,24], index: 2, kind: input, shape index: {}]   ;;  %s4194_s3 = inlined_call_operand.hbm [shape: f32[1,24], index: 3, kind: input, shape index: {}]   ;;  %s4195_s4 = inlined_call_operand.hbm [shape: f32[1,24], index: 4, kind: input, shape index: {}]   ;;  %s4196_s5 = inlined_call_operand.hbm [shape: f32[9,24], index: 5, kind: input, shape index: {}]   ;;  %s4197_s6 = inlined_call_operand.hbm [shape: f32[1,24], index: 6, kind: input, shape index: {}]   ;;  %s4198_s7 = inlined_call_operand.hbm [shape: f32[1,24], index: 7, kind: input, shape index: {}]   ;;  %s4199_s8 = inlined_call_operand.hbm [shape: f32[4,24], index: 8, kind: input, shape index: {}]   ;;  %s4200_s9 = inlined_call_operand.hbm [shape: f32[4,1], index: 9, kind: input, shape index: {}]   ;;  %s4201_s10 = inlined_call_operand.hbm [shape: f32[4,1], index: 10, kind: input, shape index: {}]   ;;  %s4202_s11 = inlined_call_operand.hbm [shape: f32[2,4,256], index: 11, kind: output, shape index: {}]  }
   0x1   :  { %4222 = sst [smem:[#allocation39_spill]] %s4191_s0 }
   0x2   :  { %4223 = sst [smem:[#allocation40_spill]] %s4192_s1 }
   0x3   :  { %4224 = sst [smem:[#allocation41_spill]] %s4193_s2 }
   0x4   :  { %4225 = sst [smem:[#allocation42_spill]] %s4194_s3 }
   0x5   :  { %4226 = sst [smem:[#allocation43_spill]] %s4195_s4 }
   0x6   :  { %4227 = sst [smem:[#allocation44_spill]] %s4196_s5 }
   0x7   :  { %4228 = sst [smem:[#allocation45_spill]] %s4197_s6 }
   0x8   :  { %4229 = sst [smem:[#allocation46_spill]] %s4198_s7 }
   0x9   :  { %4230 = sst [smem:[#allocation47_spill]] %s4199_s8 }
   0xa   :  { %4231 = sst [smem:[#allocation48_spill]] %s4200_s9 }
   0xb   :  { %4232 = sst [smem:[#allocation49_spill]] %s4201_s10 }
   0xc   :  { %4233 = sst [smem:[#allocation50_spill]] %s4202_s11 }
   0xd   :  { %16 = vsyncpa [#allocation4], 0 }
   0xe   :  { %18 = vsyncpa [#allocation4 + $0x1], 0 }
   0xf   :  { %19 = vsyncpa [#allocation7], 0 }
  0x10   :  { %21 = vsyncpa [#allocation7 + $0x1], 0 }
  0x11   :  { %22 = vsyncpa [#allocation10], 0 }
  0x12   :  { %23 = vsyncpa [#allocation13], 0 }
  0x13   :  { %24 = vsyncpa [#allocation16], 0 }
  0x14   :  { %25 = vsyncpa [#allocation19], 0 }
  0x15   :  { %26 = vsyncpa [#allocation5], 0 }
  0x16   :  { %28 = vsyncpa [#allocation5 + $0x1], 0  ;;  %s3099_s17 = smov 0   ;;  %s3101_s18 = smov 0  }
  0x17   :  { %s3103_s19 = smov 0   ;;  %s3105_s20 = smov 0  }
  0x18   :  { %s3107_s21 = smov 0   ;;  %s3109_s22 = smov 0  }
  0x19   :  { %s3111_s23 = smov 0   ;;  %s3113_s24 = smov 0  }
  0x1a   :  { %s3115_s25 = smov 0   ;;  %s3117_s26 = smov 0  }
  0x1b   :  { %s3119_s27 = smov 0  }
  0x1c LB: > { %4234 = sst [smem:[#allocation30_spill]] %s2977_s17  ;;  %s3155_s28 = sadd.s32 4294967295, %s3017_s27   ;;  %s3017_s27 = sphi %s3119_s27, %s34_s27   ;;  %s3013_s26 = sphi %s3117_s26, %s4308_s26   ;;  %s3009_s25 = sphi %s3115_s25, %s4307_s25   ;;  %s3005_s24 = sphi %s3113_s24, %s4306_s24   ;;  %s3001_s23 = sphi %s3111_s23, %s4305_s23   ;;  %s2997_s22 = sphi %s3109_s22, %s4304_s22   ;;  %s2993_s21 = sphi %s3107_s21, %s4303_s21   ;;  %s2989_s20 = sphi %s3105_s20, %s4302_s20   ;;  %s2985_s19 = sphi %s3103_s19, %s4301_s19   ;;  %s2981_s18 = sphi %s3101_s18, %s4298_s18   ;;  %s2977_s17 = sphi %s3099_s17, %s4297_s17  }
  0x1d   : > { %4235 = sst [smem:[#allocation31_spill]] %s2981_s18  ;;  %p2125_p0 = scmp.ge.s32.totalorder %s3017_s27, 1 }
  0x1e   : > { %4236 = sst [smem:[#allocation32_spill]] %s2985_s19  ;;  %p4208_p1 = scmp.eq.s32.totalorder %s3155_s28, 0 }
  0x1f   : > { %4237 = sst [smem:[#allocation33_spill]] %s3001_s23  ;;  %p326_p2 = scmp.lt.s32.totalorder %s3017_s27, 5 }
  0x20   : > { %4238 = sst [smem:[#allocation34_spill]] %s3005_s24  ;;  %s3019_s30 = smov [#allocation8]  }
  0x21   : > { %4239 = sst [smem:[#allocation35_spill]] %s3155_s28  ;;  %p3160_p3 = pnand %p2125_p0, %p326_p2 }
  0x22   : > { %s339_s12 = sshll.u32 %s3019_s30, 4  ;;  %s3020_s13 = smov [#allocation9]   ;;  %s340_s12 = int_to_ptr.vmem [resolvable:$true] %s339_s12 }
  0x23   : > { %s4240_s29 = scalar_select %p3160_p3, 1, 0 }
  0x24   : > { %p2392_p4 = pneg %p3160_p3  ;;  %s350_s14 = sshll.u32 %s3020_s13, 4  ;;  %s3172_s14 = int_to_ptr.vmem [resolvable:$true] %s350_s14 }
  0x25   : > { %4241 = sst [smem:[#allocation36_spill]] %s4240_s29  ;;  %s3021_s16 = smov [#allocation12]  }
  0x26   : > { %p3168_p5 = pnand %p2392_p4, %p4208_p1  ;;  %s371_s11 = sshll.u32 %s3021_s16, 4  ;;  %s3174_s11 = int_to_ptr.vmem [resolvable:$true] %s371_s11 }
  0x27   : > { %s4243_s2 = sld [smem:[#allocation41_spill]] }
  0x28   : > { %p3184_p7 = pneg %p3168_p5 }
  0x2d   : > { %s2559_s30 = scalar_lea.hbm %s4243_s2, 64 }
  0x2e   : > { %p2560_p6 = scmp.ne.s32.totalorder %s4243_s2, %s2559_s30  ;;  %p2566_p10 = scmp.lt.u32.totalorder %s2559_s30, %s4243_s2 }
  0x30   : > { %p2562_p8 = pnand %p3184_p7, %p2560_p6 }
  0x32   : > { %p2563_p9 = pneg %p2562_p8 }
  0x34   : > { %p2568_p11 = pnand %p2566_p10, %p2563_p9 }
  0x36   : > { %2571 = shalt.err (!%p2568_p11)
}
  0x37   : > { %s2572_s23 = scalar_lea.vmem %s340_s12, 64  ;;  %p2580_p2 = scmp.lt.s32.totalorder %s340_s12, %s340_s12 }
  0x38   : > { %p2573_p12 = scmp.ne.s32.totalorder %s340_s12, %s2572_s23  ;;  %p2581_p4 = scmp.lt.s32.totalorder %s2572_s23, %s2572_s23 }
  0x3a   : > { %p2575_p13 = pnand %p2573_p12, %p3184_p7  ;;  %p2582_p1 = por %p2581_p4, %p2580_p2 }
  0x3c   : > { %p2576_p0 = pneg %p2575_p13 }
  0x3e   : > { %p2583_p3 = pnand %p2582_p1, %p2576_p0 }
  0x40   : > { %2586 = shalt.err (!%p2583_p3)
}
  0x41   : > { %2395 = dma.hbm_to_vmem [thread:$0]  (!%p3168_p5), %s4243_s2, 64, %s340_s12, [#allocation7]  }
  0x42   : > { %s4245_s3 = sld [smem:[#allocation42_spill]] }
  0x48   : > { %s2587_s30 = scalar_lea.hbm %s4245_s3, 16 }
  0x49   : > { %p2588_p6 = scmp.ne.s32.totalorder %s4245_s3, %s2587_s30  ;;  %p2594_p1 = scmp.lt.u32.totalorder %s2587_s30, %s4245_s3 }
  0x4b   : > { %p2590_p8 = pnand %p2588_p6, %p3184_p7 }
  0x4d   : > { %p2591_p9 = pneg %p2590_p8 }
  0x4f   : > { %p2596_p3 = pnand %p2594_p1, %p2591_p9 }
  0x51   : > { %2599 = shalt.err (!%p2596_p3)
}
  0x52   : > { %s2600_s12 = scalar_lea.vmem %s3172_s14, 16  ;;  %s2607_s17 = scalar_lea.vmem %s3172_s14, 32 }
  0x53   : > { %p2601_p10 = scmp.ne.s32.totalorder %s3172_s14, %s2600_s12  ;;  %p2608_p13 = scmp.lt.s32.totalorder %s3172_s14, %s3172_s14 }
  0x54   : > { %p2609_p0 = scmp.lt.s32.totalorder %s2607_s17, %s2600_s12 }
  0x55   : > { %p2603_p11 = pnand %p2601_p10, %p3184_p7 }
  0x56   : > { %p2610_p2 = por %p2609_p0, %p2608_p13 }
  0x57   : > { %p2604_p12 = pneg %p2603_p11 }
  0x59   : > { %p2611_p4 = pnand %p2610_p2, %p2604_p12 }
  0x5b   : > { %2614 = shalt.err (!%p2611_p4)
}
  0x5c   : > { %2398 = dma.hbm_to_vmem [thread:$0]  (!%p3168_p5), %s4245_s3, 16, %s3172_s14, [#allocation10]  }
  0x5d   : > { %s4246_s5 = sld [smem:[#allocation44_spill]] }
  0x63   : > { %s2615_s29 = scalar_lea.hbm %s4246_s5, 256 }
  0x64   : > { %p2616_p6 = scmp.ne.s32.totalorder %s4246_s5, %s2615_s29  ;;  %p2622_p1 = scmp.lt.u32.totalorder %s2615_s29, %s4246_s5 }
  0x66   : > { %p2618_p8 = pnand %p2616_p6, %p3184_p7 }
  0x68   : > { %p2619_p9 = pneg %p2618_p8 }
  0x6a   : > { %p2624_p3 = pnand %p2622_p1, %p2619_p9 }
  0x6c   : > { %2627 = shalt.err (!%p2624_p3)
}
  0x6d   : > { %s2628_s14 = scalar_lea.vmem %s3174_s11, 256  ;;  %p2636_p13 = scmp.lt.s32.totalorder %s3174_s11, %s3174_s11 }
  0x6e   : > { %p2629_p10 = scmp.ne.s32.totalorder %s3174_s11, %s2628_s14  ;;  %p2637_p0 = scmp.lt.s32.totalorder %s2628_s14, %s2628_s14 }
  0x70   : > { %p2631_p11 = pnand %p2629_p10, %p3184_p7  ;;  %p2638_p2 = por %p2637_p0, %p2636_p13 }
  0x72   : > { %p2632_p12 = pneg %p2631_p11 }
  0x74   : > { %p2639_p4 = pnand %p2638_p2, %p2632_p12 }
  0x76   : > { %2642 = shalt.err (!%p2639_p4)
}
  0x77   : > { %s3022_s17 = smov 128   ;;  %s3023_s18 = smov 8  }
  0x78   : > { %2404 = dma.hbm_to_vmem [thread:$0]  (!%p3168_p5), %s4246_s5, 256, %s3174_s11, [#allocation13], %s3022_s17, %s3022_s17, %s3023_s18  }
  0x79   : > { %s3024_s0 = smov [#allocation15]   ;;  %s3025_s30 = smov [#allocation18]  }
  0x7a   : > { %s396_s29 = sshll.u32 %s3024_s0, 4  ;;  %s418_s16 = sshll.u32 %s3025_s30, 4  ;;  %s397_s29 = int_to_ptr.vmem [resolvable:$true] %s396_s29  ;;  %s419_s16 = int_to_ptr.vmem [resolvable:$true] %s418_s16 }
  0x7b   : > { %s4247_s7 = sld [smem:[#allocation46_spill]] }
  0x81   : > { %s2643_s14 = scalar_lea.hbm %s4247_s7, 16 }
  0x82   : > { %p2644_p6 = scmp.ne.s32.totalorder %s4247_s7, %s2643_s14  ;;  %p2650_p1 = scmp.lt.u32.totalorder %s2643_s14, %s4247_s7 }
  0x84   : > { %p2646_p8 = pnand %p2644_p6, %p3184_p7 }
  0x86   : > { %p2647_p9 = pneg %p2646_p8 }
  0x88   : > { %p2652_p3 = pnand %p2650_p1, %p2647_p9 }
  0x8a   : > { %2655 = shalt.err (!%p2652_p3)
}
  0x8b   : > { %s2656_s11 = scalar_lea.vmem %s397_s29, 16  ;;  %s2663_s17 = scalar_lea.vmem %s397_s29, 32 }
  0x8c   : > { %p2657_p10 = scmp.ne.s32.totalorder %s397_s29, %s2656_s11  ;;  %p2664_p13 = scmp.lt.s32.totalorder %s397_s29, %s397_s29 }
  0x8d   : > { %p2665_p0 = scmp.lt.s32.totalorder %s2663_s17, %s2656_s11 }
  0x8e   : > { %p2659_p11 = pnand %p2657_p10, %p3184_p7 }
  0x8f   : > { %p2666_p2 = por %p2665_p0, %p2664_p13 }
  0x90   : > { %p2660_p12 = pneg %p2659_p11 }
  0x92   : > { %p2667_p4 = pnand %p2666_p2, %p2660_p12 }
  0x94   : > { %2670 = shalt.err (!%p2667_p4)
}
  0x95   : > { %2410 = dma.hbm_to_vmem [thread:$0]  (!%p3168_p5), %s4247_s7, 16, %s397_s29, [#allocation16]  }
  0x96   : > { %s4248_s9 = sld [smem:[#allocation48_spill]] }
  0x9c   : > { %s2671_s18 = scalar_lea.hbm %s4248_s9, 64 }
  0x9d   : > { %p2672_p6 = scmp.ne.s32.totalorder %s4248_s9, %s2671_s18  ;;  %p2678_p1 = scmp.lt.u32.totalorder %s2671_s18, %s4248_s9 }
  0x9f   : > { %p2674_p8 = pnand %p2672_p6, %p3184_p7 }
  0xa1   : > { %p2675_p9 = pneg %p2674_p8 }
  0xa3   : > { %p2680_p3 = pnand %p2678_p1, %p2675_p9 }
  0xa5   : > { %2683 = shalt.err (!%p2680_p3)
}
  0xa6   : > { %s2684_s23 = scalar_lea.vmem %s419_s16, 64  ;;  %p2692_p13 = scmp.lt.s32.totalorder %s419_s16, %s419_s16 }
  0xa7   : > { %p2685_p10 = scmp.ne.s32.totalorder %s419_s16, %s2684_s23  ;;  %p2693_p0 = scmp.lt.s32.totalorder %s2684_s23, %s2684_s23 }
  0xa9   : > { %p2687_p11 = pnand %p2685_p10, %p3184_p7  ;;  %p2694_p2 = por %p2693_p0, %p2692_p13 }
  0xab   : > { %p2688_p12 = pneg %p2687_p11 }
  0xad   : > { %p2695_p4 = pnand %p2694_p2, %p2688_p12 }
  0xaf   : > { %2698 = shalt.err (!%p2695_p4)
}
  0xb0   : > { %2416 = dma.hbm_to_vmem [thread:$0]  (!%p3168_p5), %s4248_s9, 64, %s419_s16, [#allocation19]  }
  0xb1   : > { %s3026_s14 = smov [#allocation11]   ;;  %s3027_s17 = smov [#allocation14]  }
  0xb2   : > { %s361_s11 = sshll.u32 %s3026_s14, 4  ;;  %s385_s2 = sshll.u32 %s3027_s17, 4  ;;  %s362_s11 = int_to_ptr.vmem [resolvable:$true] %s361_s11  ;;  %s386_s2 = int_to_ptr.vmem [resolvable:$true] %s385_s2 }
  0xb3   : > { %s4249_s4 = sld [smem:[#allocation43_spill]] }
  0xb9   : > { %s2699_s28 = scalar_lea.hbm %s4249_s4, 16 }
  0xba   : > { %p2700_p6 = scmp.ne.s32.totalorder %s4249_s4, %s2699_s28  ;;  %p2706_p1 = scmp.lt.u32.totalorder %s2699_s28, %s4249_s4 }
  0xbc   : > { %p2702_p8 = pnand %p2700_p6, %p3184_p7 }
  0xbe   : > { %p2703_p9 = pneg %p2702_p8 }
  0xc0   : > { %p2708_p3 = pnand %p2706_p1, %p2703_p9 }
  0xc2   : > { %2711 = shalt.err (!%p2708_p3)
}
  0xc3   : > { %s2712_s16 = scalar_lea.vmem %s362_s11, 16  ;;  %s2719_s30 = scalar_lea.vmem %s362_s11, 32 }
  0xc4   : > { %p2713_p10 = scmp.ne.s32.totalorder %s362_s11, %s2712_s16  ;;  %p2720_p13 = scmp.lt.s32.totalorder %s362_s11, %s362_s11 }
  0xc5   : > { %p2721_p0 = scmp.lt.s32.totalorder %s2719_s30, %s2712_s16 }
  0xc6   : > { %p2715_p11 = pnand %p2713_p10, %p3184_p7 }
  0xc7   : > { %p2722_p2 = por %p2721_p0, %p2720_p13 }
  0xc8   : > { %p2716_p12 = pneg %p2715_p11 }
  0xca   : > { %p2723_p4 = pnand %p2722_p2, %p2716_p12 }
  0xcc   : > { %2726 = shalt.err (!%p2723_p4)
}
  0xcd   : > { %2401 = dma.hbm_to_vmem [thread:$0]  (!%p3168_p5), %s4249_s4, 16, %s362_s11, [#allocation10]  }
  0xce   : > { %s4250_s6 = sld [smem:[#allocation45_spill]] }
  0xd4   : > { %s2727_s17 = scalar_lea.hbm %s4250_s6, 16 }
  0xd5   : > { %p2728_p6 = scmp.ne.s32.totalorder %s4250_s6, %s2727_s17  ;;  %p2734_p1 = scmp.lt.u32.totalorder %s2727_s17, %s4250_s6 }
  0xd7   : > { %p2730_p8 = pnand %p2728_p6, %p3184_p7 }
  0xd9   : > { %p2731_p9 = pneg %p2730_p8 }
  0xdb   : > { %p2736_p3 = pnand %p2734_p1, %p2731_p9 }
  0xdd   : > { %2739 = shalt.err (!%p2736_p3)
}
  0xde   : > { %s2740_s1 = scalar_lea.vmem %s386_s2, 16  ;;  %s2747_s11 = scalar_lea.vmem %s386_s2, 32 }
  0xdf   : > { %p2741_p10 = scmp.ne.s32.totalorder %s386_s2, %s2740_s1  ;;  %p2748_p13 = scmp.lt.s32.totalorder %s386_s2, %s386_s2 }
  0xe0   : > { %p2749_p0 = scmp.lt.s32.totalorder %s2747_s11, %s2740_s1 }
  0xe1   : > { %p2743_p11 = pnand %p2741_p10, %p3184_p7 }
  0xe2   : > { %p2750_p2 = por %p2749_p0, %p2748_p13 }
  0xe3   : > { %p2744_p12 = pneg %p2743_p11 }
  0xe5   : > { %p2751_p4 = pnand %p2750_p2, %p2744_p12 }
  0xe7   : > { %2754 = shalt.err (!%p2751_p4)
}
  0xe8   : > { %2407 = dma.hbm_to_vmem [thread:$0]  (!%p3168_p5), %s4250_s6, 16, %s386_s2, [#allocation13]  }
  0xe9   : > { %s3028_s16 = smov [#allocation17]   ;;  %s3029_s23 = smov [#allocation20]  }
  0xea   : > { %s407_s30 = sshll.u32 %s3028_s16, 4  ;;  %s429_s29 = sshll.u32 %s3029_s23, 4  ;;  %s408_s30 = int_to_ptr.vmem [resolvable:$true] %s407_s30  ;;  %s430_s29 = int_to_ptr.vmem [resolvable:$true] %s429_s29 }
  0xeb   : > { %s4251_s8 = sld [smem:[#allocation47_spill]] }
  0xf1   : > { %s2755_s17 = scalar_lea.hbm %s4251_s8, 64 }
  0xf2   : > { %p2756_p6 = scmp.ne.s32.totalorder %s4251_s8, %s2755_s17  ;;  %p2762_p1 = scmp.lt.u32.totalorder %s2755_s17, %s4251_s8 }
  0xf4   : > { %p2758_p8 = pnand %p2756_p6, %p3184_p7 }
  0xf6   : > { %p2759_p9 = pneg %p2758_p8 }
  0xf8   : > { %p2764_p3 = pnand %p2762_p1, %p2759_p9 }
  0xfa   : > { %2767 = shalt.err (!%p2764_p3)
}
  0xfb   : > { %s2768_s2 = scalar_lea.vmem %s408_s30, 64  ;;  %p2776_p13 = scmp.lt.s32.totalorder %s408_s30, %s408_s30 }
  0xfc   : > { %p2769_p10 = scmp.ne.s32.totalorder %s408_s30, %s2768_s2  ;;  %p2777_p0 = scmp.lt.s32.totalorder %s2768_s2, %s2768_s2 }
  0xfe   : > { %p2771_p11 = pnand %p2769_p10, %p3184_p7  ;;  %p2778_p2 = por %p2777_p0, %p2776_p13 }
 0x100   : > { %p2772_p12 = pneg %p2771_p11 }
 0x102   : > { %p2779_p4 = pnand %p2778_p2, %p2772_p12 }
 0x104   : > { %2782 = shalt.err (!%p2779_p4)
}
 0x105   : > { %2413 = dma.hbm_to_vmem [thread:$0]  (!%p3168_p5), %s4251_s8, 64, %s408_s30, [#allocation16]  }
 0x106   : > { %s4252_s10 = sld [smem:[#allocation49_spill]] }
 0x10c   : > { %s2783_s16 = scalar_lea.hbm %s4252_s10, 64 }
 0x10d   : > { %p2784_p6 = scmp.ne.s32.totalorder %s4252_s10, %s2783_s16  ;;  %p2790_p1 = scmp.lt.u32.totalorder %s2783_s16, %s4252_s10 }
 0x10f   : > { %p2786_p8 = pnand %p2784_p6, %p3184_p7 }
 0x111   : > { %p2787_p9 = pneg %p2786_p8 }
 0x113   : > { %p2792_p3 = pnand %p2790_p1, %p2787_p9 }
 0x115   : > { %2795 = shalt.err (!%p2792_p3)
}
 0x116   : > { %s2796_s3 = scalar_lea.vmem %s430_s29, 64  ;;  %p2804_p13 = scmp.lt.s32.totalorder %s430_s29, %s430_s29 }
 0x117   : > { %p2797_p10 = scmp.ne.s32.totalorder %s430_s29, %s2796_s3  ;;  %p2805_p0 = scmp.lt.s32.totalorder %s2796_s3, %s2796_s3 }
 0x119   : > { %p2799_p11 = pnand %p2797_p10, %p3184_p7  ;;  %p2806_p2 = por %p2805_p0, %p2804_p13 }
 0x11b   : > { %p2800_p12 = pneg %p2799_p11 }
 0x11d   : > { %p2807_p4 = pnand %p2806_p2, %p2800_p12 }
 0x11f   : > { %2810 = shalt.err (!%p2807_p4)
}
 0x120   : > { %s4253_s13 = sld [smem:[#allocation32_spill]]  ;;  %s4254_s28 = sld [smem:[#allocation35_spill]] }
 0x121   : > { %2419 = dma.hbm_to_vmem [thread:$0]  (!%p3168_p5), %s4252_s10, 64, %s430_s29, [#allocation19]  }
 0x122   : > { %s43_s18 = sadd.s32 1, %s3009_s25  ;;  %s46_s2 = sadd.s32 1, %s3013_s26 }
 0x123   : > { %p44_p7 = scmp.ge.s32.totalorder %s43_s18, 2  ;;  %s55_s1 = sadd.s32 1, %s2997_s22 }
 0x124   : > { %p62_p6 = scmp.ne.s32.totalorder %s2997_s22, %s2993_s21  ;;  %p63_p8 = scmp.eq.s32.totalorder %s3017_s27, 0 }
 0x125   : > { %s4310_s18 = smov (%p44_p7, %s43_s18), 0  ;;  %s4312_s2 = smov (!%p44_p7, %s46_s2), %s3013_s26 }
 0x126   : > { %4255 = sst [smem:[#allocation37_spill]] %s4310_s18  ;;  %s51_s11 = ssub.s32 %s3009_s25, %s4310_s18 }
 0x127   : > { %s4256_s29 = sld [smem:[#allocation31_spill]]  ;;  %p3372_p5 = por %p63_p8, %p62_p6 }
 0x128   : > { %p48_p9 = scmp.ge.s32.totalorder %s4312_s2, 2  ;;  %p4215_p1 = scmp.ne.s32.totalorder %s2993_s21, %s2989_s20 }
 0x129   : > { %s2123_s0 = sshll.u32 %s3013_s26, 1  ;;  %s4258_s16 = sld [smem:[#allocation30_spill]] }
 0x12a   : > { %s85_s23 = sadd.s32 1, %s4253_s13  ;;  %s4314_s2 = smov (%p48_p9, %s4312_s2), 0 }
 0x12b   : > { %4259 = sst [smem:[#allocation38_spill]] %s4314_s2  ;;  %p4260_p3 = scmp.eq.s32.totalorder %s4254_s28, 0 }
 0x12c   : > { %s3392_s14 = sadd.s32 %s3009_s25, %s2123_s0  ;;  %s50_s17 = ssub.s32 %s3013_s26, %s4314_s2 }
 0x12d   : > { %p3387_p10 = por %p4260_p3, %p4215_p1  ;;  %s2124_s3 = sshll.u32 %s4314_s2, 1 }
 0x12e   : > { %s52_s30 = sor.u32 %s51_s11, %s50_s17  ;;  %s81_s19 = sadd.s32 %s2124_s3, %s4310_s18 }
 0x12f   : > { %s4261_s12 = scalar_select %p3387_p10, 1, 0 }
 0x130   : > { %p53_p11 = scmp.eq.s32.totalorder %s52_s30, 0  ;;  %s82_s15 = ssub.s32 %s3392_s14, %s81_s19 }
 0x131   : > { %p83_p12 = scmp.eq.s32.totalorder %s82_s15, 0  ;;  %p92_p13 = scmp.ne.s32.totalorder %s4253_s13, %s4256_s29 }
 0x132   : > { %s3402_s4 = scalar_select %p53_p11, %s2997_s22, %s55_s1  }
 0x133   : > { %s3405_s0 = scalar_select %p83_p12, %s4253_s13, %s85_s23  }
 0x134   : > { %p3409_p0 = por %p92_p13, %p63_p8  ;;  %p98_p2 = scmp.ne.s32.totalorder %s4256_s29, %s4258_s16 }
 0x135   : > { %p313_p4 = scmp.eq.s32.totalorder %s4254_s28, 3  ;;  %s4263_s11 = sadd.s32 4294967294, %s3017_s27  }
 0x136   : > { %p319_p7 = scmp.eq.s32.totalorder %s4263_s11, 3  ;;  %p4264_p9 = pmov %p4260_p3 }
 0x137   : > { %p4218_p11 = scmp.lt.s32.totalorder %s3017_s27, 4  ;;  %p3428_p1 = por %p313_p4, %p62_p6 }
 0x138   : > { %p3420_p3 = por %p98_p2, %p4264_p9  ;;  %p4267_p8 = scmp.ne.s32.totalorder %s2993_s21, %s2989_s20 }
 0x139   : > { %s4266_s1 = scalar_select %p3428_p1, 1, 0 }
 0x13a   : > { %s4265_s15 = scalar_select %p3420_p3, 1, 0 }
 0x13b   : > { %p3435_p12 = por %p319_p7, %p4267_p8  ;;  %s440_s29 = sand.u32 1, %s2997_s22  }
 0x13c   : > { %s2138_s16 = sshll.u32 %s3392_s14, 6  ;;  %s2136_s17 = sshll.u32 %s440_s29, 2 }
 0x13d   : > { %s4268_s23 = scalar_select %p3435_p12, 1, 0 }
 0x13e   : > { %s4269_s30 = sld [smem:[#allocation39_spill]]  ;;  %s444_s11 = scalar_lea.vmem [#allocation3], %s2136_s17 }
 0x13f   : > { %s453_s6 = sshll.u32 %s444_s11, 4  ;;  %p3450_p6 = pnand %p4218_p11, %p3372_p5  ;;  %s3454_s6 = int_to_ptr.vmem [resolvable:$true] %s453_s6 }
 0x140   : > { %s2206_s8 = sshll.u32 %s3392_s14, 7  ;;  %s4271_s28 = sld [smem:[#allocation40_spill]] }
 0x141   : > { %s441_s10 = scalar_lea.sflag [#allocation4], %s440_s29  ;;  %p2813_p2 = pneg %p3450_p6 }
 0x144   : > { %s3444_s19 = scalar_lea.hbm %s4269_s30, %s2138_s16  ;;  %s2816_s2 = scalar_lea.hbm %s4269_s30, 256 }
 0x145   : > { %s2811_s17 = scalar_lea.hbm %s3444_s19, 64  ;;  %p2817_p7 = scmp.lt.u32.totalorder %s3444_s19, %s4269_s30 }
 0x146   : > { %s3460_s9 = scalar_lea.hbm %s4271_s28, %s2206_s8  ;;  %p2812_p13 = scmp.ne.s32.totalorder %s3444_s19, %s2811_s17 }
 0x147   : > { %p2818_p9 = scmp.lt.u32.totalorder %s2816_s2, %s2811_s17  ;;  %p2820_p11 = scmp.lt.u32.totalorder %s2811_s17, %s3444_s19 }
 0x148   : > { %p2814_p5 = pnand %p2813_p2, %p2812_p13 }
 0x149   : > { %p2819_p8 = por %p2818_p9, %p2817_p7 }
 0x14a   : > { %p2815_p4 = pneg %p2814_p5 }
 0x14b   : > { %p2821_p12 = por %p2820_p11, %p2819_p8 }
 0x14d   : > { %p2822_p1 = pnand %p2821_p12, %p2815_p4 }
 0x14f   : > { %2825 = shalt.err (!%p2822_p1)
}
 0x150   : > { %s2826_s8 = scalar_lea.vmem %s3454_s6, 64  ;;  %s3030_s29 = smov [#allocation3]  }
 0x151   : > { %p2827_p13 = scmp.ne.s32.totalorder %s3454_s6, %s2826_s8  ;;  %s2831_s3 = sshll.u32 %s3030_s29, 4  ;;  %s2832_s3 = int_to_ptr.vmem [resolvable:$false] %s2831_s3 }
 0x152   : > { %s2833_s18 = scalar_lea.vmem %s2832_s3, 128  ;;  %p2834_p10 = scmp.lt.s32.totalorder %s3454_s6, %s2832_s3 }
 0x153   : > { %p2829_p5 = pnand %p2827_p13, %p2813_p2  ;;  %p2835_p7 = scmp.lt.s32.totalorder %s2833_s18, %s2826_s8 }
 0x155   : > { %p2830_p3 = pneg %p2829_p5  ;;  %p2836_p9 = por %p2835_p7, %p2834_p10 }
 0x157   : > { %p2837_p11 = pnand %p2836_p9, %p2830_p3 }
 0x159   : > { %2840 = shalt.err (!%p2837_p11)
}
 0x15a   : > { %2423 = dma.hbm_to_vmem [thread:$0]  (!%p3450_p6), %s3444_s19, 64, %s3454_s6, %s441_s10  }
 0x15b   : > { %p4272_p1 = scmp.lt.s32.totalorder %s3017_s27, 4  ;;  %s460_s16 = sand.u32 1, %s3017_s27  }
 0x15c   : > { %s462_s7 = sand.u32 1, %s4253_s13   ;;  %s3499_s14 = scalar_lea.sflag [#allocation7], %s460_s16 }
 0x15d   : > { %p3491_p12 = pnand %p4272_p1, %p3409_p0  ;;  %s2139_s17 = sshll.u32 %s462_s7, 3 }
 0x15e   : > { %s464_s24 = scalar_lea.vmem [#allocation6], %s2139_s17  ;;  %s2841_s8 = scalar_lea.hbm %s3460_s9, 128 }
 0x15f   : > { %s473_s11 = sshll.u32 %s464_s24, 4  ;;  %p2842_p10 = scmp.ne.s32.totalorder %s3460_s9, %s2841_s8  ;;  %s3497_s11 = int_to_ptr.vmem [resolvable:$true] %s473_s11 }
 0x160   : > { %p2843_p3 = pneg %p3491_p12  ;;  %s2846_s10 = scalar_lea.hbm %s4271_s28, 512 }
 0x161   : > { %p2847_p2 = scmp.lt.u32.totalorder %s3460_s9, %s4271_s28  ;;  %p2848_p4 = scmp.lt.u32.totalorder %s2846_s10, %s2841_s8 }
 0x162   : > { %p2844_p0 = pnand %p2843_p3, %p2842_p10  ;;  %p2850_p13 = scmp.lt.u32.totalorder %s2841_s8, %s3460_s9 }
 0x163   : > { %p2849_p8 = por %p2848_p4, %p2847_p2 }
 0x164   : > { %p2845_p6 = pneg %p2844_p0 }
 0x165   : > { %p2851_p5 = por %p2850_p13, %p2849_p8 }
 0x167   : > { %p2852_p7 = pnand %p2851_p5, %p2845_p6 }
 0x169   : > { %2855 = shalt.err (!%p2852_p7)
}
 0x16a   : > { %s2856_s29 = scalar_lea.vmem %s3497_s11, 128  ;;  %s3031_s3 = smov [#allocation6]  }
 0x16b   : > { %p2857_p9 = scmp.ne.s32.totalorder %s3497_s11, %s2856_s29  ;;  %s2861_s18 = sshll.u32 %s3031_s3, 4  ;;  %s2862_s18 = int_to_ptr.vmem [resolvable:$false] %s2861_s18 }
 0x16c   : > { %s2863_s16 = scalar_lea.vmem %s2862_s18, 256  ;;  %p2864_p10 = scmp.lt.s32.totalorder %s3497_s11, %s2862_s18 }
 0x16d   : > { %p2859_p11 = pnand %p2857_p9, %p2843_p3  ;;  %p2865_p0 = scmp.lt.s32.totalorder %s2863_s16, %s2856_s29 }
 0x16f   : > { %p2860_p1 = pneg %p2859_p11  ;;  %p2866_p2 = por %p2865_p0, %p2864_p10 }
 0x171   : > { %p2867_p4 = pnand %p2866_p2, %p2860_p1 }
 0x173   : > { %2870 = shalt.err (!%p2867_p4)
}
 0x174   : > { %s3032_s7 = smov 32   ;;  %s3033_s17 = smov 2  }
 0x175   : > { %2426 = dma.hbm_to_vmem [thread:$0]  (!%p3491_p12), %s3460_s9, 128, %s3497_s11, %s3499_s14, %s3032_s7, %s3032_s7, %s3033_s17  }
 0x176   : > { %s4274_s24 = sld [smem:[#allocation36_spill]] }
 0x17c   : > { %p4275_p3 = scmp.ne.s32.totalorder %s4274_s24, 0 }
 0x17d   : > { %s3530_s8 = sand.u32 (!%p4275_p3), 1, %s2993_s21   ;;  %p4276_p6 = scmp.ne.s32.totalorder (!%p4275_p3), %s4261_s12, 0 }
 0x17e   : > { %485 = sbr.rel (%p4275_p3) target bundleno = 1140 (0x474), region = 64  ;;  %s2144_s5 = sshll.u32 (!%p4275_p3), %s3530_s8, 2 }
 0x17f   : > { %s488_s6 = scalar_lea.sflag (!%p4275_p3), [#allocation4], %s3530_s8  ;;  %s3536_s10 = scalar_lea.vmem (!%p4275_p3), [#allocation3], %s2144_s5 }
 0x185   : > { %2944 = dma.done.wait (%p4276_p6), %s488_s6, 64  }
 0x186   : > { %2946 = vsyncadd (%p4276_p6), %s488_s6, 4294967232  ;;  %s4277_s9 = sld [smem:[#allocation35_spill]]  ;;  %s4278_s2 = sld [smem:[#allocation31_spill]] }
 0x187   : > { %p4279_p12 = scmp.ne.s32.totalorder %s4265_s15, 0 }
 0x18c   : > { %s496_s11 = sand.u32 1, %s4277_s9   ;;  %s498_s14 = sand.u32 1, %s4278_s2  }
 0x18d   : > { %s2145_s13 = sshll.u32 %s498_s14, 3  ;;  %s497_s19 = scalar_lea.sflag [#allocation7], %s496_s11 }
 0x18e   : > { %s500_s29 = scalar_lea.vmem [#allocation6], %s2145_s13 }
 0x18f   : > { %2948 = dma.done.wait (%p4279_p12), %s497_s19, 128  }
 0x190   : > { %2950 = vsyncadd (%p4279_p12), %s497_s19, 4294967168  ;;  %p4280_p8 = scmp.eq.s32.totalorder %s4277_s9, 0 }
 0x192   : > { %2952 = dma.done.wait (%p4280_p8), [#allocation7], 64   ;;  %p4281_p13 = pmov %p4280_p8 }
 0x193   : > { %p4282_p5 = pmov %p4280_p8 }
 0x194   : > { %2954 = vsyncadd (%p4281_p13), [#allocation7], 4294967232 }
 0x195   : > { %2956 = dma.done.wait (%p4282_p5), [#allocation10], 32   ;;  %p4283_p7 = pmov %p4282_p5 }
 0x196   : > { %p4284_p9 = pmov %p4282_p5 }
 0x197   : > { %2958 = vsyncadd (%p4283_p7), [#allocation10], 4294967264 }
 0x198   : > { %2960 = dma.done.wait (%p4284_p9), [#allocation13], 272   ;;  %p4285_p11 = pmov %p4282_p5 }
 0x199   : > { %p4286_p1 = pmov %p4282_p5 }
 0x19a   : > { %2962 = vsyncadd (%p4285_p11), [#allocation13], 4294967024 }
 0x19b   : > { %2964 = dma.done.wait (%p4286_p1), [#allocation16], 80   ;;  %p4287_p10 = pmov %p4286_p1 }
 0x19c   : > { %p4288_p0 = pmov %p4286_p1 }
 0x19d   : > { %2966 = vsyncadd (%p4287_p10), [#allocation16], 4294967216 }
 0x19e   : > { %2968 = dma.done.wait (%p4288_p0), [#allocation19], 128   ;;  %p4289_p2 = pmov %p4288_p0 }
 0x19f   : > { %vm621_vm0 = vcmask 1041409   ;;  %vm624_vm1 = vcmask 1042434   ;;  %v916_v0 = vld [vmem:[%s3536_s10] sm:$0xf]  ;;  %v612_v1 = vld [vmem:[%s500_s29] sm:$0x1]  ;;  %v1241_v51 = vlaneseq }
 0x1a0   : > { %2970 = vsyncadd (%p4289_p2), [#allocation19], 4294967168  ;;  %v613_v2 = vld [vmem:[%s500_s29 + $0x2] sm:$0x1]  ;;  %917 = vxpose.xlu1.b32.start.end [1/1] (short) %v916_v0, 128  ;;  %v614_v3 = vld [vmem:[%s500_s29 + $0x4] sm:$0x1] }
 0x1a1   : > { %v615_v4 = vld [vmem:[%s500_s29 + $0x6] sm:$0x1]  ;;  %v620_v5 = vrot.slane %v613_v2, 7  ;;  %vm627_vm2 = vcmask 1043459   ;;  %v623_v6 = vrot.slane %v614_v3, 6  ;;  %vm669_vm3 = vcmask 1043456  }
 0x1a2   : > { %v626_v7 = vrot.slane %v615_v4, 5  ;;  %v771_v8 = vld [vmem:[%s500_s29 + $0x1] sm:$0x1]  ;;  %v772_v9 = vld [vmem:[%s500_s29 + $0x3] sm:$0x1]  ;;  %vm662_vm4 = vcmask 31744  }
 0x1a3   : > { %v622_v10 = vsel %vm621_vm0, %v620_v5, %v612_v1  ;;  %v773_v11 = vld [vmem:[%s500_s29 + $0x5] sm:$0x1]  ;;  %v774_v12 = vld [vmem:[%s500_s29 + $0x7] sm:$0x1]  ;;  %v779_v13 = vrot.slane %v772_v9, 7  ;;  %vm585_vm5 = vcmask 189440  }
 0x1a4   : > { %v625_v14 = vsel %vm624_vm1, %v623_v6, %v622_v10  ;;  %v781_v15 = vrot.slane %v773_v11, 6  ;;  %v783_v16 = vrot.slane %v774_v12, 5  ;;  %v582_v21 = vld [vmem:[#allocation8] sm:$0xf]  ;;  %v3034_v42 = vmov 0.0   ;;  %s4290_s12 = sld [smem:[#allocation33_spill]] }
 0x1a5   : > { %v628_v17 = vsel %vm627_vm2, %v626_v7, %v625_v14  ;;  %v780_v18 = vsel %vm621_vm0, %v779_v13, %v771_v8  ;;  %2247 = vmatprep.subr.msk.mxu0 %vm669_vm3, %v582_v21  ;;  %586 = vst.msk [vmem:[#allocation2 + $0x6] sm:$0x3] %vm585_vm5, %v3034_v42  ;;  %587 = vst.msk [vmem:[#allocation2 + $0x26] sm:$0x3] %vm585_vm5, %v3034_v42  ;;  %v3035_v43 = vmov 0.0|0.0   ;;  %v3632_v57 = vshrl.u32 %v1241_v51, 7 }
 0x1a6   : > { %630 = vxpose.xlu0.b32.start.end [1/1] (short) (narrow) %v628_v17, 16  ;;  %v782_v19 = vsel %vm624_vm1, %v781_v15, %v780_v18  ;;  %2248 = vmatpush3.msk.msra.mxu0 %vm669_vm3, %v582_v21  ;;  %588 = vst.msk [vmem:[#allocation2 + $0x46] sm:$0x3] %vm585_vm5, %v3034_v42  ;;  %596 = vst.msk [vmem:[#allocation2 + $0x18] sm:$0x3] %vm585_vm5, %v3034_v42  ;;  %vm3036_vm6 = vmmov 0  }
 0x1a7   : > { %v784_v20 = vsel %vm627_vm2, %v783_v16, %v782_v19  ;;  %2252 = vmatprep.subr.msk.mxu0 %vm669_vm3, %v582_v21  ;;  %597 = vst.msk [vmem:[#allocation2 + $0x38] sm:$0x3] %vm585_vm5, %v3034_v42  ;;  %598 = vst.msk [vmem:[#allocation2 + $0x58] sm:$0x3] %vm585_vm5, %v3034_v42  ;;  %2318 = vmatprep.subr.bf16.mxu1 %v3035_v43  ;;  %v3623_v44 = vld [vmem:[#allocation9] ss:$0 sm:$0xff] }
 0x1a8   : > { %589 = vst.msk [vmem:[#allocation2 + $0x66] sm:$0x3] %vm585_vm5, %v3034_v42  ;;  %590 = vst.msk [vmem:[#allocation2 + $0x86] sm:$0x3] %vm585_vm5, %v3034_v42  ;;  %v3625_v45 = vld [vmem:[#allocation11] ss:$0 sm:$0xff]  ;;  %2315 = vmatprep.mubr.msk.f32.mxu1 %vm3036_vm6, %v3034_v42 }
 0x1a9   : > { %591 = vst.msk [vmem:[#allocation2 + $0xa6] sm:$0x3] %vm585_vm5, %v3034_v42  ;;  %592 = vst.msk [vmem:[#allocation2 + $0xc6] sm:$0x3] %vm585_vm5, %v3034_v42  ;;  %vm910_vm7 = vcmask 195584   ;;  %v1295_v2 = vsub.s32 1, %v3632_v57 }
 0x1aa   : > { %593 = vst.msk [vmem:[#allocation2 + $0xe6] sm:$0x3] %vm585_vm5, %v3034_v42  ;;  %594 = vst.msk [vmem:[#allocation2 + $0x106] sm:$0x3] %vm585_vm5, %v3034_v42  ;;  %p606_p4 = scmp.gt.s32.totalorder %s4290_s12, 0  ;;  %p609_p3 = scmp.lt.s32.totalorder %s4290_s12, 1 }
 0x1ab   : > { %786 = vxpose.xlu0.b32.start.end [1/1] (short) (narrow) %v784_v20, 16  ;;  %595 = vst.msk [vmem:[#allocation2 + $0x126] sm:$0x3] %vm585_vm5, %v3034_v42  ;;  %599 = vst.msk [vmem:[#allocation2 + $0x78] sm:$0x3] %vm585_vm5, %v3034_v42  ;;  %v3641_v5 = vld [vmem:[#allocation12] sm:$0xff] }
 0x1ac   : > { %600 = vst.msk [vmem:[#allocation2 + $0x98] sm:$0x3] %vm585_vm5, %v3034_v42  ;;  %601 = vst.msk [vmem:[#allocation2 + $0xb8] sm:$0x3] %vm585_vm5, %v3034_v42  ;;  %s607_s15 = scalar_select %p606_p4, 1, 0  ;;  %v3648_v18 = vrot.slane %v3641_v5, %v1295_v2 }
 0x1ad   : > { %602 = vst.msk [vmem:[#allocation2 + $0xd8] sm:$0x3] %vm585_vm5, %v3034_v42  ;;  %603 = vst.msk [vmem:[#allocation2 + $0xf8] sm:$0x3] %vm585_vm5, %v3034_v42  ;;  %s610_s18 = scalar_select %p609_p3, 1, 0 }
 0x1ae   : > { %604 = vst.msk [vmem:[#allocation2 + $0x118] sm:$0x3] %vm585_vm5, %v3034_v42  ;;  %605 = vst.msk [vmem:[#allocation2 + $0x138] sm:$0x3] %vm585_vm5, %v3034_v42  ;;  %s608_s3 = scvt.s32.f32 %s607_s15  ;;  %v1243_v6 = vsub.s32 0, %v3632_v57  ;;  %v3037_v14 = vmov 0  }
 0x1af   : > { %s611_s16 = scvt.s32.f32 %s610_s18  ;;  %v1894_v10 = vld [vmem:[#allocation18] sm:$0xf]  ;;  %v1901_v15 = vld [vmem:[#allocation20] sm:$0xf]  ;;  %vm3808_vm8 = vmpackc.low %vm910_vm7, %vm910_vm7  ;;  %s4293_s7 = sld [smem:[#allocation34_spill]] }
 0x1b0   : > { %v768_v54 = vstv %s608_s3  ;;  %s579_s9 = scalar_lea.vmem [#allocation21], %s2144_s5  ;;  %s4294_s13 = sld [smem:[#allocation50_spill]] }
 0x1b1   : > { %v907_v11 = vstv %s611_s16  ;;  %s1926_s2 = sshll.u32 %s579_s9, 4  ;;  %s1911_s29 = scalar_lea.sflag [#allocation5], %s3530_s8  ;;  %s4130_s2 = int_to_ptr.vmem [resolvable:$true] %s1926_s2 }
 0x1b2   : > { %p4295_p12 = scmp.ne.s32.totalorder %s4266_s1, 0  ;;  %s3038_s5 = smov [#allocation21]  }
 0x1b5   : > { %s2202_s17 = sshll.u32 %s4293_s7, 1 }
 0x1b6   : > { %s1922_s24 = sadd.s32 %s4290_s12, %s2202_s17  ;;  %s2871_s12 = scalar_lea.vmem %s4130_s2, 64 }
 0x1b7   : > { %s2203_s6 = sshll.u32 %s1922_s24, 6  ;;  %p2872_p6 = scmp.ne.s32.totalorder %s4130_s2, %s2871_s12 }
 0x1b8   : > { %s4128_s19 = scalar_lea.hbm %s4294_s13, %s2203_s6 }
 0x1b9   : > { %p2873_p8 = pnand %p2872_p6, %p4295_p12 }
 0x1bb   : > { %p2874_p13 = pneg %p2873_p8 }
 0x1be   : > { %2556 = vset.pattern.permute.xlu1 %v3037_v14 }
 0x1d4   : > { %2557 = vset.pattern.permute.xlu0 %v3037_v14 }
 0x1d8   : > { %1904 = vperm.xlu0 %2557, %v1901_v15  }
 0x1fa   : > { %1897 = vperm.xlu1 %2556, %v1894_v10  }
 0x220   : > { %v933_v22 = vpop.trf.xlu1 }
 0x224   : > { %v934_v23 = vpop.trf.xlu1 }
 0x226   : > { %v646_v24 = vpop.trf.xlu0 }
 0x227   : > { %2249 = vmatprep.mubr.msk.f32.mxu0 %vm662_vm4, %v646_v24 }
 0x228   : > { %v935_v25 = vpop.trf.xlu1 }
 0x22a   : > { %v647_v26 = vpop.trf.xlu0 }
 0x22b   : > { %2250 = vmatmul.mubr.msk.f32.vlgmr.msra.gmra.mrb[0].mxu0 %vm662_vm4, %v647_v26 }
 0x22c   : > { %2253 = vmatpush3.msk.msra.mxu0 %vm669_vm3, %v582_v21  ;;  %v936_v27 = vpop.trf.xlu1 }
 0x22d   : > { %2257 = vmatprep.subr.msk.mxu0 %vm669_vm3, %v582_v21 }
 0x22e   : > { %v802_v28 = vpop.trf.xlu0 }
 0x22f   : > { %2254 = vmatprep.mubr.msk.f32.mxu0 %vm662_vm4, %v802_v28 }
 0x230   : > { %v937_v29 = vpop.trf.xlu1 }
 0x232   : > { %v803_v30 = vpop.trf.xlu0 }
 0x233   : > { %2255 = vmatmul.mubr.msk.f32.vlgmr.msra.gmra.mrb[2].mxu0 %vm662_vm4, %v803_v30 }
 0x234   : > { %2258 = vmatpush3.msk.msra.mxu0 %vm669_vm3, %v582_v21  ;;  %2259 = vmatprep.mubr.msk.f32.mxu0 %vm662_vm4, %v933_v22  ;;  %v938_v31 = vpop.trf.xlu1  ;;  %v3652_v22 = vrot.slane %v3641_v5, %v1243_v6 }
 0x237   : > { %2260 = vmatmul.mubr.msk.f32.vlgmr.msra.gmra.mrb[4].mxu0 %vm662_vm4, %v934_v23 }
 0x238   : > { %2262 = vmatprep.mubr.msk.f32.mxu0 %vm662_vm4, %v935_v25  ;;  %v939_v32 = vpop.trf.xlu1 }
 0x23b   : > { %2263 = vmatmul.mubr.msk.f32.gmra.mrb[6].mxu0 %vm662_vm4, %v936_v27  ;;  %v1347_v27 = vsub.s32 2, %v3632_v57 }
 0x23c   : > { %2265 = vmatprep.mubr.msk.f32.mxu0 %vm662_vm4, %v937_v29  ;;  %v940_v33 = vpop.trf.xlu1 }
 0x23f   : > { %2266 = vmatmul.mubr.msk.f32.gmra.mrb[8].mxu0 %vm662_vm4, %v938_v31 }
 0x240   : > { %2268 = vmatprep.mubr.msk.f32.mxu0 %vm662_vm4, %v939_v32  ;;  %v941_v34 = vpop.trf.xlu1  ;;  %v1451_v32 = vsub.s32 4, %v3632_v57 }
 0x243   : > { %2269 = vmatmul.mubr.msk.f32.gmra.mrb[10].mxu0 %vm662_vm4, %v940_v33 }
 0x244   : > { %2271 = vmatprep.mubr.msk.f32.mxu0 %vm662_vm4, %v941_v34  ;;  %v942_v35 = vpop.trf.xlu1 }
 0x247   : > { %2272 = vmatmul.mubr.msk.f32.gmra.mrb[12].mxu0 %vm662_vm4, %v942_v35 }
 0x248   : > { %v943_v36 = vpop.trf.xlu1 }
 0x249   : > { %2274 = vmatprep.mubr.msk.f32.mxu0 %vm662_vm4, %v943_v36 }
 0x24c   : > { %v944_v37 = vpop.trf.xlu1 }
 0x24d   : > { %2275 = vmatmul.mubr.msk.f32.gmra.mrb[14].mxu0 %vm662_vm4, %v944_v37 }
 0x250   : > { %v945_v38 = vpop.trf.xlu1 }
 0x251   : > { %2277 = vmatprep.mubr.msk.f32.mxu0 %vm662_vm4, %v945_v38 }
 0x254   : > { %v946_v39 = vpop.trf.xlu1 }
 0x255   : > { %2278 = vmatmul.mubr.msk.f32.gmra.mrb[16].mxu0 %vm662_vm4, %v946_v39  ;;  %v1503_v39 = vsub.s32 5, %v3632_v57 }
 0x257   : > { %v3688_v10 = vrot.slane %v3641_v5, %v1503_v39 }
 0x258   : > { %v947_v40 = vpop.trf.xlu1 }
 0x259   : > { %2280 = vmatprep.mubr.msk.f32.mxu0 %vm662_vm4, %v947_v40 }
 0x25c   : > { %v948_v41 = vpop.trf.xlu1 }
 0x25d   : > { %2281 = vmatmul.mubr.msk.f32.gmra.mrb[18].mxu0 %vm662_vm4, %v948_v41 }
 0x2fe   : > { %v2251_v46 = vpop.f32.mrb[0].mxu0 }
 0x2ff   : > { %v755_v47 = vmul.f32 %v2251_v46, %v3623_v44  ;;  %v739_v48 = vpop.f32.mrb[1].mxu0 }
 0x300   : > { %v754_v49 = vmul.f32 %v3623_v44, %v739_v48 }
 0x301   : > { %v763_v50 = vadd.f32 %v3625_v45, %v755_v47 }
 0x302   : > { %v762_v52 = vadd.f32 %v3625_v45, %v754_v49 }
 0x303   : > { %v765_v53 = vmax.f32 %v763_v50, 0.0 }
 0x304   : > { %v764_v55 = vmax.f32 %v762_v52, 0.0  ;;  %v1399_v52 = vsub.s32 3, %v3632_v57 }
 0x305   : > { %v767_v56 = vmin.f32 %v765_v53, 6.0 }
 0x306   : > { %v766_v58 = vmin.f32 %v764_v55, 6.0  ;;  %v2256_v59 = vpop.f32.mrb[2].mxu0  ;;  %v3673_v55 = vrot.slane %v3641_v5, %v1347_v27 }
 0x307   : > { %v770_v60 = vmul.f32 %v768_v54, %v767_v56  ;;  %v900_v61 = vmul.f32 %v2256_v59, %v3623_v44  ;;  %v890_v62 = vpop.f32.mrb[3].mxu0  ;;  %v1608_v56 = vsub.s32 7, %v3632_v57 }
 0x308   : > { %v769_v63 = vmul.f32 %v768_v54, %v766_v58  ;;  %v899_v0 = vmul.f32 %v3623_v44, %v890_v62  ;;  %v3678_v62 = vrot.slane %v3641_v5, %v1451_v32 }
 0x309   : > { %912 = vst.msk [vmem:[#allocation2 + $0x10] sm:$0xff] %vm910_vm7, %v770_v60  ;;  %v902_v1 = vadd.f32 %v3625_v45, %v900_v61 }
 0x30a   : > { %911 = vst.msk [vmem:[#allocation2 + $0x8] sm:$0xff] %vm910_vm7, %v769_v63  ;;  %v901_v3 = vadd.f32 %v3625_v45, %v899_v0  ;;  %v2261_v4 = vpop.f32.mrb[4].mxu0  ;;  %v1556_v63 = vsub.s32 6, %v3632_v57 }
 0x30b   : > { %v904_v7 = vmax.f32 %v902_v1, 0.0  ;;  %v1143_v8 = vmul.f32 %v2261_v4, %v3623_v44  ;;  %v1063_v9 = vpop.f32.mrb[5].mxu0 }
 0x30c   : > { %v903_v12 = vmax.f32 %v901_v3, 0.0  ;;  %v1142_v13 = vmul.f32 %v3623_v44, %v1063_v9  ;;  %v3685_v9 = vrot.slane %v3641_v5, %v1399_v52 }
 0x30d   : > { %v906_v16 = vmin.f32 %v904_v7, 6.0  ;;  %v1159_v17 = vadd.f32 %v3625_v45, %v1143_v8 }
 0x30e   : > { %v905_v19 = vmin.f32 %v903_v12, 6.0  ;;  %v1158_v20 = vadd.f32 %v3625_v45, %v1142_v13  ;;  %v2264_v21 = vpop.f32.mrb[6].mxu0 }
 0x30f   : > { %v909_v23 = vmul.f32 %v907_v11, %v906_v16  ;;  %v1175_v24 = vmax.f32 %v1159_v17, 0.0  ;;  %v1145_v25 = vmul.f32 %v2264_v21, %v3623_v44  ;;  %v1073_v26 = vpop.f32.mrb[7].mxu0  ;;  %v3696_v16 = vrot.slane %v3641_v5, %v1556_v63 }
 0x310   : > { %v908_v28 = vmul.f32 %v907_v11, %v905_v19  ;;  %v1174_v29 = vmax.f32 %v1158_v20, 0.0  ;;  %v1144_v30 = vmul.f32 %v3623_v44, %v1073_v26  ;;  %v1278_v31 = vld [vmem:[#allocation2 + $0x10] sm:$0xff]  ;;  %v3699_v17 = vrot.slane %v3641_v5, %v1608_v56 }
 0x311   : > { %915 = vst.msk [vmem:[#allocation2 + $0x130] sm:$0xff] %vm910_vm7, %v909_v23  ;;  %v1191_v33 = vmin.f32 %v1175_v24, 6.0  ;;  %v1161_v34 = vadd.f32 %v3625_v45, %v1145_v25  ;;  %v1225_v35 = vld [vmem:[#allocation2 + $0x7] sm:$0xff]  ;;  %v1226_v36 = vld [vmem:[#allocation2 + $0xf] sm:$0xff]  ;;  %v1298_v38 = vmul.f32 %v3648_v18, %v1278_v31 }
 0x312   : > { %v1277_v37 = vld [vmem:[#allocation2 + $0x8] sm:$0xff]  ;;  %914 = vst.msk [vmem:[#allocation2 + $0x128] sm:$0xff] %vm910_vm7, %v908_v28  ;;  %v1190_v40 = vmin.f32 %v1174_v29, 6.0  ;;  %v1160_v41 = vadd.f32 %v3625_v45, %v1144_v30  ;;  %v2267_v42 = vpop.f32.mrb[8].mxu0  ;;  %v1245_v46 = vmul.f32 %v3652_v22, %v1225_v35  ;;  %v1246_v47 = vmul.f32 %v3652_v22, %v1226_v36  ;;  %v1330_v61 = vld [vmem:[#allocation2 + $0x11] sm:$0xff] }
 0x313   : > { %1208 = vst.msk [vmem:[#allocation2 + $0x30] sm:$0xff] %vm910_vm7, %v1191_v33  ;;  %v1177_v48 = vmax.f32 %v1161_v34, 0.0  ;;  %v1147_v49 = vmul.f32 %v2267_v42, %v3623_v44  ;;  %v1083_v50 = vpop.f32.mrb[9].mxu0  ;;  %v1297_v51 = vmul.f32 %v3648_v18, %v1277_v37  ;;  %v1329_v60 = vld [vmem:[#allocation2 + $0x9] sm:$0xff]  ;;  %v1350_v13 = vmul.f32 %v3673_v55, %v1330_v61 }
 0x314   : > { %1207 = vst.msk [vmem:[#allocation2 + $0x28] sm:$0xff] %vm910_vm7, %v1190_v40  ;;  %v1176_v53 = vmax.f32 %v1160_v41, 0.0  ;;  %v1146_v54 = vmul.f32 %v3623_v44, %v1083_v50  ;;  %v1314_v4 = vadd.f32 %v1298_v38, %v1246_v47  ;;  %v1349_v12 = vmul.f32 %v3673_v55, %v1329_v60 }
 0x315   : > { %v1193_v58 = vmin.f32 %v1177_v48, 6.0  ;;  %v1163_v59 = vadd.f32 %v3625_v45, %v1147_v49  ;;  %v1313_v3 = vadd.f32 %v1297_v51, %v1245_v46  ;;  %v3717_v48 = vld [vmem:[#allocation12 + $0x8] ss:$0 sm:$0xff] }
 0x316   : > { %v1192_v0 = vmin.f32 %v1176_v53, 6.0  ;;  %v1162_v1 = vadd.f32 %v3625_v45, %v1146_v54  ;;  %v2270_v2 = vpop.f32.mrb[10].mxu0  ;;  %v1366_v24 = vadd.f32 %v1350_v13, %v1314_v4 }
 0x317   : > { %1210 = vst.msk [vmem:[#allocation2 + $0x50] sm:$0xff] %vm910_vm7, %v1193_v58  ;;  %v1179_v6 = vmax.f32 %v1163_v59, 0.0  ;;  %v1149_v7 = vmul.f32 %v2270_v2, %v3623_v44  ;;  %v1093_v8 = vpop.f32.mrb[11].mxu0  ;;  %v1365_v23 = vadd.f32 %v1349_v12, %v1313_v3 }
 0x318   : > { %1209 = vst.msk [vmem:[#allocation2 + $0x48] sm:$0xff] %vm910_vm7, %v1192_v0  ;;  %v1178_v57 = vmax.f32 %v1162_v1, 0.0  ;;  %v1148_v11 = vmul.f32 %v3623_v44, %v1093_v8 }
 0x319   : > { %v1195_v14 = vmin.f32 %v1179_v6, 6.0  ;;  %v1165_v15 = vadd.f32 %v3625_v45, %v1149_v7 }
 0x31a   : > { %v1194_v19 = vmin.f32 %v1178_v57, 6.0  ;;  %v1164_v20 = vadd.f32 %v3625_v45, %v1148_v11  ;;  %v2273_v21 = vpop.f32.mrb[12].mxu0  ;;  %v1434_v25 = vld [vmem:[#allocation2 + $0x30] sm:$0xff] }
 0x31b   : > { %v3702_v26 = vld [vmem:[#allocation2 + $0x31] sm:$0xff]  ;;  %1212 = vst.msk [vmem:[#allocation2 + $0x70] sm:$0xff] %vm910_vm7, %v1195_v14  ;;  %v1181_v27 = vmax.f32 %v1165_v15, 0.0  ;;  %v1151_v28 = vmul.f32 %v2273_v21, %v3623_v44  ;;  %v1103_v29 = vpop.f32.mrb[13].mxu0  ;;  %v1381_v30 = vld [vmem:[#allocation2 + $0x27] sm:$0xff]  ;;  %v1454_v5 = vmul.f32 %v3678_v62, %v1434_v25 }
 0x31c   : > { %v1382_v31 = vld [vmem:[#allocation2 + $0x2f] sm:$0xff]  ;;  %v1506_v33 = vmul.f32 %v3688_v10, %v3702_v26  ;;  %1211 = vst.msk [vmem:[#allocation2 + $0x68] sm:$0xff] %vm910_vm7, %v1194_v19  ;;  %v1180_v34 = vmax.f32 %v1164_v20, 0.0  ;;  %v1150_v35 = vmul.f32 %v3623_v44, %v1103_v29  ;;  %v1401_v36 = vmul.f32 %v3685_v9, %v1381_v30 }
 0x31d   : > { %v1433_v32 = vld [vmem:[#allocation2 + $0x28] sm:$0xff]  ;;  %v1402_v37 = vmul.f32 %v3685_v9, %v1382_v31  ;;  %v1197_v39 = vmin.f32 %v1181_v27, 6.0  ;;  %v1167_v40 = vadd.f32 %v3625_v45, %v1151_v28  ;;  %v1247_v61 = vmul.f32 %v1381_v30, %v3652_v22 }
 0x31e   : > { %v1485_v38 = vld [vmem:[#allocation2 + $0x29] sm:$0xff]  ;;  %v1453_v41 = vmul.f32 %v3678_v62, %v1433_v32  ;;  %v1196_v46 = vmin.f32 %v1180_v34, 6.0  ;;  %v1166_v47 = vadd.f32 %v3625_v45, %v1150_v35  ;;  %v1417_v49 = vadd.f32 %v1401_v36, %v1365_v23  ;;  %v3721_v52 = vld [vmem:[#allocation2 + $0x51] sm:$0xff] }
 0x31f   : > { %v1505_v42 = vmul.f32 %v3688_v10, %v1485_v38  ;;  %v1418_v50 = vadd.f32 %v1402_v37, %v1366_v24  ;;  %v3719_v51 = vld [vmem:[#allocation2 + $0x50] sm:$0xff]  ;;  %1214 = vst.msk [vmem:[#allocation2 + $0x90] sm:$0xff] %vm910_vm7, %v1197_v39  ;;  %v1183_v53 = vmax.f32 %v1167_v40, 0.0  ;;  %v3724_v54 = vld [vmem:[#allocation2 + $0x47] sm:$0xff]  ;;  %v1663_v60 = vmul.f32 %v3717_v48, %v3721_v52 }
 0x320   : > { %v3726_v56 = vld [vmem:[#allocation2 + $0x4f] sm:$0xff]  ;;  %v1611_v59 = vmul.f32 %v3699_v17, %v3719_v51  ;;  %1213 = vst.msk [vmem:[#allocation2 + $0x88] sm:$0xff] %vm910_vm7, %v1196_v46  ;;  %v1182_v63 = vmax.f32 %v1166_v47, 0.0  ;;  %v1469_v0 = vadd.f32 %v1453_v41, %v1417_v49  ;;  %v1558_v2 = vmul.f32 %v3696_v16, %v3724_v54  ;;  %v2276_v6 = vpop.f32.mrb[14].mxu0 }
 0x321   : > { %v3728_v58 = vld [vmem:[#allocation2 + $0x48] sm:$0xff]  ;;  %v1470_v1 = vadd.f32 %v1454_v5, %v1418_v50  ;;  %v1199_v4 = vmin.f32 %v1183_v53, 6.0  ;;  %v1559_v7 = vmul.f32 %v3696_v16, %v3726_v56  ;;  %v1153_v12 = vmul.f32 %v2276_v6, %v3623_v44  ;;  %v1113_v13 = vpop.f32.mrb[15].mxu0  ;;  %v3760_v37 = vld [vmem:[#allocation14] ss:$0 sm:$0xff] }
 0x322   : > { %v3738_v3 = vld [vmem:[#allocation2 + $0x49] sm:$0xff]  ;;  %v1610_v8 = vmul.f32 %v3699_v17, %v3728_v58  ;;  %v1198_v11 = vmin.f32 %v1182_v63, 6.0  ;;  %v1521_v14 = vadd.f32 %v1505_v42, %v1469_v0  ;;  %v1152_v19 = vmul.f32 %v3623_v44, %v1113_v13  ;;  %v3766_v50 = vld [vmem:[#allocation15] ss:$0 sm:$0xff] }
 0x323   : > { %v1662_v57 = vmul.f32 %v3717_v48, %v3738_v3  ;;  %v1522_v15 = vadd.f32 %v1506_v33, %v1470_v1  ;;  %1216 = vst.msk [vmem:[#allocation2 + $0xb0] sm:$0xff] %vm910_vm7, %v1199_v4  ;;  %v1248_v20 = vmul.f32 %v1382_v31, %v3652_v22  ;;  %v1299_v21 = vmul.f32 %v1433_v32, %v3648_v18 }
 0x324   : > { %v1300_v23 = vmul.f32 %v1434_v25, %v3648_v18  ;;  %1215 = vst.msk [vmem:[#allocation2 + $0xa8] sm:$0xff] %vm910_vm7, %v1198_v11  ;;  %v1169_v24 = vadd.f32 %v3625_v45, %v1153_v12  ;;  %v1574_v27 = vadd.f32 %v1558_v2, %v1521_v14  ;;  %v1351_v29 = vmul.f32 %v1485_v38, %v3673_v55  ;;  %v3785_v14 = vld [vmem:[#allocation2 + $0x6f] sm:$0xff] }
 0x325   : > { %v1575_v28 = vadd.f32 %v1559_v7, %v1522_v15  ;;  %v1168_v30 = vadd.f32 %v3625_v45, %v1152_v19  ;;  %v1315_v5 = vadd.f32 %v1299_v21, %v1247_v61  ;;  %v1352_v34 = vmul.f32 %v3702_v26, %v3673_v55 }
 0x326   : > { %v1316_v33 = vadd.f32 %v1300_v23, %v1248_v20  ;;  %v1185_v31 = vmax.f32 %v1169_v24, 0.0  ;;  %v1626_v35 = vadd.f32 %v1610_v8, %v1574_v27  ;;  %v1403_v25 = vmul.f32 %v3724_v54, %v3685_v9  ;;  %v3792_v24 = vld [vmem:[#allocation2 + $0x68] sm:$0xff] }
 0x327   : > { %v1627_v32 = vadd.f32 %v1611_v59, %v1575_v28  ;;  %v1184_v36 = vmax.f32 %v1168_v30, 0.0  ;;  %v1367_v39 = vadd.f32 %v1351_v29, %v1315_v5  ;;  %v1404_v38 = vmul.f32 %v3726_v56, %v3685_v9  ;;  %v3794_v27 = vld [vmem:[#allocation2 + $0x69] sm:$0xff] }
 0x328   : > { %v1368_v40 = vadd.f32 %v1352_v34, %v1316_v33  ;;  %v1201_v41 = vmin.f32 %v1185_v31, 6.0  ;;  %v1678_v42 = vadd.f32 %v1662_v57, %v1626_v35  ;;  %v1455_v26 = vmul.f32 %v3728_v58, %v3678_v62  ;;  %v2279_v49 = vpop.f32.mrb[16].mxu0  ;;  %v3780_v57 = vld [vmem:[#allocation2 + $0x67] sm:$0xff]  ;;  %v3796_v5 = vld [vmem:[#allocation2 + $0x70] sm:$0xff] }
 0x329   : > { %v1679_v46 = vadd.f32 %v1663_v60, %v1627_v32  ;;  %v1200_v47 = vmin.f32 %v1184_v36, 6.0  ;;  %v1419_v53 = vadd.f32 %v1403_v25, %v1367_v39  ;;  %v1456_v61 = vmul.f32 %v3719_v51, %v3678_v62  ;;  %v1123_v0 = vpop.f32.mrb[17].mxu0  ;;  %v3800_v34 = vld [vmem:[#allocation2 + $0x71] sm:$0xff] }
 0x32a   : > { %v1420_v59 = vadd.f32 %v1404_v38, %v1368_v40  ;;  %1218 = vst.msk [vmem:[#allocation2 + $0xd0] sm:$0xff] %vm910_vm7, %v1201_v41  ;;  %v1155_v63 = vmul.f32 %v2279_v49, %v3623_v44  ;;  %v1702_v1 = vmul.f32 %v3760_v37, %v1678_v42  ;;  %v1507_v2 = vmul.f32 %v3738_v3, %v3688_v10 }
 0x32b   : > { %v1703_v60 = vmul.f32 %v3760_v37, %v1679_v46  ;;  %1217 = vst.msk [vmem:[#allocation2 + $0xc8] sm:$0xff] %vm910_vm7, %v1200_v47  ;;  %v1154_v4 = vmul.f32 %v3623_v44, %v1123_v0  ;;  %v1471_v6 = vadd.f32 %v1455_v26, %v1419_v53  ;;  %v1508_v8 = vmul.f32 %v3721_v52, %v3688_v10 }
 0x32c   : > { %v1472_v7 = vadd.f32 %v1456_v61, %v1420_v59  ;;  %v1171_v11 = vadd.f32 %v3625_v45, %v1155_v63  ;;  %v1724_v12 = vadd.f32 %v3766_v50, %v1702_v1  ;;  %v1560_v15 = vmul.f32 %v3696_v16, %v3780_v57 }
 0x32d   : > { %v1725_v13 = vadd.f32 %v3766_v50, %v1703_v60  ;;  %v1170_v19 = vadd.f32 %v3625_v45, %v1154_v4  ;;  %v1523_v20 = vadd.f32 %v1507_v2, %v1471_v6  ;;  %v1561_v23 = vmul.f32 %v3696_v16, %v3785_v14 }
 0x32e   : > { %v1524_v21 = vadd.f32 %v1508_v8, %v1472_v7  ;;  %v1187_v28 = vmax.f32 %v1171_v11, 0.0  ;;  %v1740_v29 = vmax.f32 %v1724_v12, 0.0  ;;  %v1612_v33 = vmul.f32 %v3699_v17, %v3792_v24 }
 0x32f   : > { %v1741_v30 = vmax.f32 %v1725_v13, 0.0  ;;  %v1186_v31 = vmax.f32 %v1170_v19, 0.0  ;;  %v1576_v35 = vadd.f32 %v1560_v15, %v1523_v20  ;;  %v1613_v25 = vmul.f32 %v3699_v17, %v3796_v5  ;;  %v3843_v20 = vld [vmem:[#allocation2 + $0x87] sm:$0xff] }
 0x330   : > { %v1577_v32 = vadd.f32 %v1561_v23, %v1524_v21  ;;  %v1203_v36 = vmin.f32 %v1187_v28, 6.0  ;;  %v1756_v39 = vmin.f32 %v1740_v29, 6.0  ;;  %v1664_v38 = vmul.f32 %v3717_v48, %v3794_v27  ;;  %v2282_v42 = vpop.f32.mrb[18].mxu0 }
 0x331   : > { %v1757_v40 = vmin.f32 %v1741_v30, 6.0  ;;  %v1202_v41 = vmin.f32 %v1186_v31, 6.0  ;;  %v1628_v26 = vadd.f32 %v1612_v33, %v1576_v35  ;;  %v1665_v49 = vmul.f32 %v3717_v48, %v3800_v34  ;;  %v1133_v59 = vpop.f32.mrb[19].mxu0  ;;  %v3849_v30 = vld [vmem:[#allocation2 + $0x8f] sm:$0xff] }
 0x332   : > { %v1629_v47 = vadd.f32 %v1613_v25, %v1577_v32  ;;  %1220 = vst.msk [vmem:[#allocation2 + $0xf0] sm:$0xff] %vm910_vm7, %v1203_v36  ;;  %v1157_v53 = vmul.f32 %v2282_v42, %v3623_v44  ;;  %v1249_v63 = vmul.f32 %v3724_v54, %v3652_v22  ;;  %v1250_v0 = vmul.f32 %v3726_v56, %v3652_v22  ;;  %v3851_v25 = vld [vmem:[#allocation2 + $0x88] sm:$0xff]  ;;  %v3853_v36 = vld [vmem:[#allocation2 + $0x90] sm:$0xff] }
 0x333   : > { %v2319_v61 = vpack.c.bf16 %v1757_v40, %v1756_v39  ;;  %1219 = vst.msk [vmem:[#allocation2 + $0xe8] sm:$0xff] %vm910_vm7, %v1202_v41  ;;  %v1156_v1 = vmul.f32 %v3623_v44, %v1133_v59  ;;  %v1680_v60 = vadd.f32 %v1664_v38, %v1628_v26  ;;  %v1301_v4 = vmul.f32 %v3728_v58, %v3648_v18  ;;  %v3855_v39 = vld [vmem:[#allocation2 + $0x89] sm:$0xff]  ;;  %v3864_v26 = vld [vmem:[#allocation2 + $0x91] sm:$0xff] }
 0x334   : > { %v1681_v2 = vadd.f32 %v1665_v49, %v1629_v47  ;;  %v1173_v6 = vadd.f32 %v3625_v45, %v1157_v53  ;;  %v1302_v54 = vmul.f32 %v3719_v51, %v3648_v18  ;;  %v1353_v56 = vmul.f32 %v3738_v3, %v3673_v55 }
 0x335   : > { %2321 = vmatpush3.bf16.xpose.msk.msra.mxu1 %vm3808_vm8, %v2319_v61  ;;  %v1354_v7 = vmul.f32 %v3721_v52, %v3673_v55  ;;  %v1172_v44 = vadd.f32 %v3625_v45, %v1156_v1  ;;  %v1704_v58 = vmul.f32 %v3760_v37, %v1680_v60  ;;  %v1317_v11 = vadd.f32 %v1301_v4, %v1249_v63 }
 0x336   : > { %2322 = vmatprep.subr.bf16.mxu1 %v3035_v43  ;;  %v1705_v8 = vmul.f32 %v3760_v37, %v1681_v2  ;;  %v1189_v12 = vmax.f32 %v1173_v6, 0.0  ;;  %v1318_v13 = vadd.f32 %v1302_v54, %v1250_v0  ;;  %v1405_v51 = vmul.f32 %v3780_v57, %v3685_v9 }
 0x337   : > { %v1406_v3 = vmul.f32 %v3785_v14, %v3685_v9  ;;  %v1188_v15 = vmax.f32 %v1172_v44, 0.0  ;;  %v1726_v52 = vadd.f32 %v3766_v50, %v1704_v58  ;;  %v1369_v19 = vadd.f32 %v1353_v56, %v1317_v11 }
 0x338   : > { %v1727_v45 = vadd.f32 %v3766_v50, %v1705_v8  ;;  %v1205_v21 = vmin.f32 %v1189_v12, 6.0  ;;  %v1370_v23 = vadd.f32 %v1354_v7, %v1318_v13  ;;  %v1457_v28 = vmul.f32 %v3792_v24, %v3678_v62  ;;  %v3896_v13 = vld [vmem:[#allocation2 + $0xa7] sm:$0xff] }
 0x339   : > { %v1458_v29 = vmul.f32 %v3796_v5, %v3678_v62  ;;  %v1204_v33 = vmin.f32 %v1188_v15, 6.0  ;;  %v1742_v31 = vmax.f32 %v1726_v52, 0.0  ;;  %v1421_v32 = vadd.f32 %v1405_v51, %v1369_v19  ;;  %v3898_v51 = vld [vmem:[#allocation2 + $0xaf] sm:$0xff] }
 0x33a   : > { %v1743_v35 = vmax.f32 %v1727_v45, 0.0  ;;  %1222 = vst.msk [vmem:[#allocation2 + $0x110] sm:$0xff] %vm910_vm7, %v1205_v21  ;;  %v1422_v40 = vadd.f32 %v1406_v3, %v1370_v23  ;;  %v1509_v38 = vmul.f32 %v3794_v27, %v3688_v10  ;;  %v1510_v41 = vmul.f32 %v3800_v34, %v3688_v10  ;;  %v3900_v3 = vld [vmem:[#allocation2 + $0xa8] sm:$0xff]  ;;  %v3908_v45 = vld [vmem:[#allocation2 + $0xb0] sm:$0xff] }
 0x33b   : > { %v1562_v42 = vmul.f32 %v3696_v16, %v3843_v20  ;;  %1221 = vst.msk [vmem:[#allocation2 + $0x108] sm:$0xff] %vm910_vm7, %v1204_v33  ;;  %v1758_v47 = vmin.f32 %v1742_v31, 6.0  ;;  %v1473_v53 = vadd.f32 %v1457_v28, %v1421_v32  ;;  %v1563_v59 = vmul.f32 %v3696_v16, %v3849_v30  ;;  %v3914_v33 = vld [vmem:[#allocation2 + $0xb1] sm:$0xff] }
 0x33c   : > { %v1759_v49 = vmin.f32 %v1743_v35, 6.0  ;;  %v1474_v61 = vadd.f32 %v1458_v29, %v1422_v40  ;;  %v1614_v63 = vmul.f32 %v3699_v17, %v3851_v25  ;;  %v1615_v0 = vmul.f32 %v3699_v17, %v3853_v36  ;;  %v3912_v29 = vld [vmem:[#allocation2 + $0xa9] sm:$0xff] }
 0x33d   : > { %v1666_v1 = vmul.f32 %v3717_v48, %v3855_v39  ;;  %v1525_v2 = vadd.f32 %v1509_v38, %v1473_v53  ;;  %v1667_v4 = vmul.f32 %v3717_v48, %v3864_v26  ;;  %v1251_v6 = vmul.f32 %v3780_v57, %v3652_v22 }
 0x33e   : > { %v2323_v60 = vpack.c.bf16 %v1759_v49, %v1758_v47  ;;  %v1526_v54 = vadd.f32 %v1510_v41, %v1474_v61  ;;  %v1252_v56 = vmul.f32 %v3785_v14, %v3652_v22  ;;  %v1303_v7 = vmul.f32 %v3792_v24, %v3648_v18 }
 0x33f   : > { %v1304_v44 = vmul.f32 %v3796_v5, %v3648_v18  ;;  %v1578_v58 = vadd.f32 %v1562_v42, %v1525_v2  ;;  %v1355_v8 = vmul.f32 %v3794_v27, %v3673_v55  ;;  %v1356_v57 = vmul.f32 %v3800_v34, %v3673_v55 }
 0x340   : > { %2325 = vmatpush3.bf16.xpose.msk.msra.mxu1 %vm3808_vm8, %v2323_v60  ;;  %v1407_v11 = vmul.f32 %v3843_v20, %v3685_v9  ;;  %v1579_v14 = vadd.f32 %v1563_v59, %v1526_v54  ;;  %v1319_v24 = vadd.f32 %v1303_v7, %v1251_v6  ;;  %v1408_v5 = vmul.f32 %v3849_v30, %v3685_v9 }
 0x341   : > { %2326 = vmatprep.subr.bf16.mxu1 %v3035_v43  ;;  %v1320_v12 = vadd.f32 %v1304_v44, %v1252_v56  ;;  %v1630_v27 = vadd.f32 %v1614_v63, %v1578_v58  ;;  %v1459_v34 = vmul.f32 %v3851_v25, %v3678_v62  ;;  %v1460_v15 = vmul.f32 %v3853_v36, %v3678_v62 }
 0x342   : > { %v1511_v52 = vmul.f32 %v3855_v39, %v3688_v10  ;;  %v1631_v19 = vadd.f32 %v1615_v0, %v1579_v14  ;;  %v1371_v21 = vadd.f32 %v1355_v8, %v1319_v24  ;;  %v1512_v28 = vmul.f32 %v3864_v26, %v3688_v10 }
 0x343   : > { %v1372_v23 = vadd.f32 %v1356_v57, %v1320_v12  ;;  %v1682_v31 = vadd.f32 %v1666_v1, %v1630_v27  ;;  %v1564_v35 = vmul.f32 %v3696_v16, %v3896_v13  ;;  %v1565_v32 = vmul.f32 %v3696_v16, %v3898_v51  ;;  %v3950_v27 = vld [vmem:[#allocation2 + $0xc7] sm:$0xff] }
 0x344   : > { %v1616_v40 = vmul.f32 %v3699_v17, %v3900_v3  ;;  %v1683_v38 = vadd.f32 %v1667_v4, %v1631_v19  ;;  %v1423_v41 = vadd.f32 %v1407_v11, %v1371_v21  ;;  %v1617_v47 = vmul.f32 %v3699_v17, %v3908_v45  ;;  %v3954_v19 = vld [vmem:[#allocation2 + $0xcf] sm:$0xff] }
 0x345   : > { %v1424_v42 = vadd.f32 %v1408_v5, %v1372_v23  ;;  %v1706_v49 = vmul.f32 %v3760_v37, %v1682_v31  ;;  %v1668_v53 = vmul.f32 %v3717_v48, %v3912_v29  ;;  %v1669_v59 = vmul.f32 %v3717_v48, %v3914_v33  ;;  %v3956_v21 = vld [vmem:[#allocation2 + $0xc8] sm:$0xff] }
 0x346   : > { %v1253_v61 = vmul.f32 %v3843_v20, %v3652_v22  ;;  %v1707_v63 = vmul.f32 %v3760_v37, %v1683_v38  ;;  %v1475_v0 = vadd.f32 %v1459_v34, %v1423_v41  ;;  %v1254_v60 = vmul.f32 %v3849_v30, %v3652_v22  ;;  %v3964_v38 = vld [vmem:[#allocation2 + $0xc9] sm:$0xff] }
 0x347   : > { %v1476_v1 = vadd.f32 %v1460_v15, %v1424_v42  ;;  %v1728_v2 = vadd.f32 %v3766_v50, %v1706_v49  ;;  %v1305_v4 = vmul.f32 %v3851_v25, %v3648_v18  ;;  %v1306_v6 = vmul.f32 %v3853_v36, %v3648_v18  ;;  %v3968_v49 = vld [vmem:[#allocation2 + $0xd1] sm:$0xff] }
 0x348   : > { %v1357_v54 = vmul.f32 %v3855_v39, %v3673_v55  ;;  %v1729_v20 = vadd.f32 %v3766_v50, %v1707_v63  ;;  %v1527_v56 = vadd.f32 %v1511_v52, %v1475_v0  ;;  %v1358_v44 = vmul.f32 %v3864_v26, %v3673_v55 }
 0x349   : > { %v1528_v7 = vadd.f32 %v1512_v28, %v1476_v1  ;;  %v1744_v58 = vmax.f32 %v1728_v2, 0.0  ;;  %v1321_v30 = vadd.f32 %v1305_v4, %v1253_v61  ;;  %v1322_v8 = vadd.f32 %v1306_v6, %v1254_v60 }
 0x34a   : > { %v1409_v57 = vmul.f32 %v3896_v13, %v3685_v9  ;;  %v1745_v25 = vmax.f32 %v1729_v20, 0.0  ;;  %v1580_v11 = vadd.f32 %v1564_v35, %v1527_v56  ;;  %v1410_v36 = vmul.f32 %v3898_v51, %v3685_v9 }
 0x34b   : > { %v1581_v14 = vadd.f32 %v1565_v32, %v1528_v7  ;;  %v1760_v39 = vmin.f32 %v1744_v58, 6.0  ;;  %v1373_v24 = vadd.f32 %v1357_v54, %v1321_v30  ;;  %v1374_v12 = vadd.f32 %v1358_v44, %v1322_v8  ;;  %v3962_v32 = vld [vmem:[#allocation2 + $0xd0] sm:$0xff] }
 0x34c   : > { %v1461_v5 = vmul.f32 %v3900_v3, %v3678_v62  ;;  %v1761_v26 = vmin.f32 %v1745_v25, 6.0  ;;  %v1632_v34 = vadd.f32 %v1616_v40, %v1580_v11  ;;  %v1462_v52 = vmul.f32 %v3908_v45, %v3678_v62 }
 0x34d   : > { %v1633_v15 = vadd.f32 %v1617_v47, %v1581_v14  ;;  %v1425_v23 = vadd.f32 %v1409_v57, %v1373_v24  ;;  %v1426_v28 = vadd.f32 %v1410_v36, %v1374_v12  ;;  %v1513_v31 = vmul.f32 %v3912_v29, %v3688_v10 }
 0x34e   : > { %v1514_v35 = vmul.f32 %v3914_v33, %v3688_v10  ;;  %v2327_v40 = vpack.c.bf16 %v1761_v26, %v1760_v39  ;;  %v1684_v41 = vadd.f32 %v1668_v53, %v1632_v34  ;;  %v1566_v47 = vmul.f32 %v3696_v16, %v3950_v27 }
 0x34f   : > { %v1685_v42 = vadd.f32 %v1669_v59, %v1633_v15  ;;  %v1477_v61 = vadd.f32 %v1461_v5, %v1425_v23  ;;  %v1478_v63 = vadd.f32 %v1462_v52, %v1426_v28  ;;  %v1567_v0 = vmul.f32 %v3696_v16, %v3954_v19 }
 0x350   : > { %v1618_v1 = vmul.f32 %v3699_v17, %v3956_v21  ;;  %2329 = vmatpush3.bf16.xpose.msk.msra.mxu1 %vm3808_vm8, %v2327_v40  ;;  %v1708_v60 = vmul.f32 %v3760_v37, %v1684_v41  ;;  %v1619_v59 = vmul.f32 %v3699_v17, %v3962_v32  ;;  %v1670_v2 = vmul.f32 %v3717_v48, %v3964_v38 }
 0x351   : > { %v1709_v53 = vmul.f32 %v3760_v37, %v1685_v42  ;;  %2330 = vmatprep.subr.bf16.mxu1 %v3035_v43  ;;  %v1529_v4 = vadd.f32 %v1513_v31, %v1477_v61  ;;  %v1530_v6 = vadd.f32 %v1514_v35, %v1478_v63  ;;  %v1671_v54 = vmul.f32 %v3717_v48, %v3968_v49  ;;  %v4015_v61 = vld [vmem:[#allocation2 + $0xef] sm:$0xff] }
 0x352   : > { %v1255_v20 = vmul.f32 %v3896_v13, %v3652_v22  ;;  %v1730_v56 = vadd.f32 %v3766_v50, %v1708_v60  ;;  %v1256_v44 = vmul.f32 %v3898_v51, %v3652_v22  ;;  %v1307_v58 = vmul.f32 %v3900_v3, %v3648_v18  ;;  %v4017_v63 = vld [vmem:[#allocation2 + $0xe8] sm:$0xff] }
 0x353   : > { %v1731_v7 = vadd.f32 %v3766_v50, %v1709_v53  ;;  %v1582_v30 = vadd.f32 %v1566_v47, %v1529_v4  ;;  %v1583_v8 = vadd.f32 %v1567_v0, %v1530_v6  ;;  %v1308_v57 = vmul.f32 %v3908_v45, %v3648_v18  ;;  %v4013_v47 = vld [vmem:[#allocation2 + $0xe7] sm:$0xff]  ;;  %v4025_v53 = vld [vmem:[#allocation2 + $0xf0] sm:$0xff] }
 0x354   : > { %v1359_v25 = vmul.f32 %v3912_v29, %v3673_v55  ;;  %v1746_v11 = vmax.f32 %v1730_v56, 0.0  ;;  %v1323_v14 = vadd.f32 %v1307_v58, %v1255_v20  ;;  %v1360_v36 = vmul.f32 %v3914_v33, %v3673_v55  ;;  %v4034_v20 = vld [vmem:[#allocation2 + $0xe9] sm:$0xff]  ;;  %v4036_v56 = vld [vmem:[#allocation2 + $0xf1] sm:$0xff] }
 0x355   : > { %v1747_v13 = vmax.f32 %v1731_v7, 0.0  ;;  %v1634_v39 = vadd.f32 %v1618_v1, %v1582_v30  ;;  %v1635_v24 = vadd.f32 %v1619_v59, %v1583_v8  ;;  %v1324_v51 = vadd.f32 %v1308_v57, %v1256_v44 }
 0x356   : > { %v1411_v3 = vmul.f32 %v3950_v27, %v3685_v9  ;;  %v1762_v12 = vmin.f32 %v1746_v11, 6.0  ;;  %v1375_v26 = vadd.f32 %v1359_v25, %v1323_v14  ;;  %v1412_v45 = vmul.f32 %v3954_v19, %v3685_v9 }
 0x357   : > { %v1763_v5 = vmin.f32 %v1747_v13, 6.0  ;;  %v1686_v34 = vadd.f32 %v1670_v2, %v1634_v39  ;;  %v1687_v29 = vadd.f32 %v1671_v54, %v1635_v24  ;;  %v1376_v15 = vadd.f32 %v1360_v36, %v1324_v51 }
 0x358   : > { %v1463_v52 = vmul.f32 %v3956_v21, %v3678_v62  ;;  %v1427_v33 = vadd.f32 %v1411_v3, %v1375_v26  ;;  %v1464_v28 = vmul.f32 %v3962_v32, %v3678_v62  ;;  %v1515_v31 = vmul.f32 %v3964_v38, %v3688_v10 }
 0x359   : > { %v2331_v23 = vpack.c.bf16 %v1763_v5, %v1762_v12  ;;  %v1710_v35 = vmul.f32 %v3760_v37, %v1686_v34  ;;  %v1711_v40 = vmul.f32 %v3760_v37, %v1687_v29  ;;  %v1428_v41 = vadd.f32 %v1412_v45, %v1376_v15 }
 0x35a   : > { %v1516_v42 = vmul.f32 %v3968_v49, %v3688_v10  ;;  %v1479_v0 = vadd.f32 %v1463_v52, %v1427_v33  ;;  %v1568_v1 = vmul.f32 %v3696_v16, %v4013_v47  ;;  %v1569_v60 = vmul.f32 %v3696_v16, %v4015_v61  ;;  %v1550_v52 = vld [vmem:[#allocation2 + $0x107] sm:$0xff] }
 0x35b   : > { %2333 = vmatpush3.bf16.xpose.msk.msra.mxu1 %vm3808_vm8, %v2331_v23  ;;  %v1620_v59 = vmul.f32 %v3699_v17, %v4017_v63  ;;  %v1732_v2 = vadd.f32 %v3766_v50, %v1710_v35  ;;  %v1733_v4 = vadd.f32 %v3766_v50, %v1711_v40  ;;  %v1480_v6 = vadd.f32 %v1464_v28, %v1428_v41 }
 0x35c   : > { %2334 = vmatprep.subr.bf16.mxu1 %v3035_v43  ;;  %v1621_v54 = vmul.f32 %v3699_v17, %v4025_v53  ;;  %v1531_v7 = vadd.f32 %v1515_v31, %v1479_v0  ;;  %v1672_v44 = vmul.f32 %v3717_v48, %v4034_v20  ;;  %v1673_v58 = vmul.f32 %v3717_v48, %v4036_v56  ;;  %v1551_v31 = vld [vmem:[#allocation2 + $0x10f] sm:$0xff] }
 0x35d   : > { %v1257_v30 = vmul.f32 %v3950_v27, %v3652_v22  ;;  %v1748_v8 = vmax.f32 %v1732_v2, 0.0  ;;  %v1749_v57 = vmax.f32 %v1733_v4, 0.0  ;;  %v1532_v25 = vadd.f32 %v1516_v42, %v1480_v6 }
 0x35e   : > { %v1258_v11 = vmul.f32 %v3954_v19, %v3652_v22  ;;  %v1584_v13 = vadd.f32 %v1568_v1, %v1531_v7  ;;  %v1309_v14 = vmul.f32 %v3956_v21, %v3648_v18  ;;  %v1310_v36 = vmul.f32 %v3962_v32, %v3648_v18  ;;  %v1602_v1 = vld [vmem:[#allocation2 + $0x108] sm:$0xff] }
 0x35f   : > { %v1361_v39 = vmul.f32 %v3964_v38, %v3673_v55  ;;  %v1764_v24 = vmin.f32 %v1748_v8, 6.0  ;;  %v1765_v51 = vmin.f32 %v1749_v57, 6.0  ;;  %v1585_v3 = vadd.f32 %v1569_v60, %v1532_v25  ;;  %v1603_v60 = vld [vmem:[#allocation2 + $0x110] sm:$0xff] }
 0x360   : > { %v1362_v27 = vmul.f32 %v3968_v49, %v3673_v55  ;;  %v1636_v12 = vadd.f32 %v1620_v59, %v1584_v13  ;;  %v1325_v5 = vadd.f32 %v1309_v14, %v1257_v30  ;;  %v1326_v26 = vadd.f32 %v1310_v36, %v1258_v11  ;;  %v1654_v59 = vld [vmem:[#allocation2 + $0x109] sm:$0xff] }
 0x361   : > { %v1413_v19 = vmul.f32 %v4013_v47, %v3685_v9  ;;  %v2335_v45 = vpack.c.bf16 %v1765_v51, %v1764_v24  ;;  %v1637_v21 = vadd.f32 %v1621_v54, %v1585_v3  ;;  %v1414_v32 = vmul.f32 %v4015_v61, %v3685_v9  ;;  %v1655_v54 = vld [vmem:[#allocation2 + $0x111] sm:$0xff] }
 0x362   : > { %v1465_v38 = vmul.f32 %v4017_v63, %v3678_v62  ;;  %v1688_v34 = vadd.f32 %v1672_v44, %v1636_v12  ;;  %v1377_v29 = vadd.f32 %v1361_v39, %v1325_v5  ;;  %v1378_v15 = vadd.f32 %v1362_v27, %v1326_v26 }
 0x363   : > { %v1466_v49 = vmul.f32 %v4025_v53, %v3678_v62  ;;  %2337 = vmatpush3.bf16.xpose.msk.msra.mxu1 %vm3808_vm8, %v2335_v45  ;;  %v1689_v23 = vadd.f32 %v1673_v58, %v1637_v21  ;;  %v1517_v33 = vmul.f32 %v4034_v20, %v3688_v10  ;;  %v1518_v28 = vmul.f32 %v4036_v56, %v3688_v10 }
 0x364   : > { %v1570_v35 = vmul.f32 %v3696_v16, %v1550_v52  ;;  %2338 = vmatprep.subr.bf16.mxu1 %v3035_v43  ;;  %v1712_v40 = vmul.f32 %v3760_v37, %v1688_v34  ;;  %v1429_v41 = vadd.f32 %v1413_v19, %v1377_v29  ;;  %v1430_v42 = vadd.f32 %v1414_v32, %v1378_v15 }
 0x365   : > { %v1571_v0 = vmul.f32 %v3696_v16, %v1551_v31  ;;  %v1713_v2 = vmul.f32 %v3760_v37, %v1689_v23  ;;  %v1622_v4 = vmul.f32 %v3699_v17, %v1602_v1  ;;  %v1623_v6 = vmul.f32 %v3699_v17, %v1603_v60  ;;  %v1552_v23 = vld [vmem:[#allocation2 + $0x127] sm:$0xff] }
 0x366   : > { %v1674_v7 = vmul.f32 %v3717_v48, %v1654_v59  ;;  %v1734_v44 = vadd.f32 %v3766_v50, %v1712_v40  ;;  %v1481_v58 = vadd.f32 %v1465_v38, %v1429_v41  ;;  %v1482_v30 = vadd.f32 %v1466_v49, %v1430_v42  ;;  %v1605_v41 = vld [vmem:[#allocation2 + $0x130] sm:$0xff] }
 0x367   : > { %v1675_v8 = vmul.f32 %v3717_v48, %v1655_v54  ;;  %v1735_v57 = vadd.f32 %v3766_v50, %v1713_v2  ;;  %v1259_v25 = vmul.f32 %v4013_v47, %v3652_v22  ;;  %v1260_v11 = vmul.f32 %v4015_v61, %v3652_v22 }
 0x368   : > { %v1311_v13 = vmul.f32 %v4017_v63, %v3648_v18  ;;  %v1750_v14 = vmax.f32 %v1734_v44, 0.0  ;;  %v1533_v36 = vadd.f32 %v1517_v33, %v1481_v58  ;;  %v1534_v39 = vadd.f32 %v1518_v28, %v1482_v30 }
 0x369   : > { %v1312_v24 = vmul.f32 %v4025_v53, %v3648_v18  ;;  %v1751_v51 = vmax.f32 %v1735_v57, 0.0  ;;  %v1363_v27 = vmul.f32 %v4034_v20, %v3673_v55  ;;  %v1364_v47 = vmul.f32 %v4036_v56, %v3673_v55 }
 0x36a   : > { %v1327_v3 = vadd.f32 %v1311_v13, %v1259_v25  ;;  %v1766_v12 = vmin.f32 %v1750_v14, 6.0  ;;  %v1586_v5 = vadd.f32 %v1570_v35, %v1533_v36  ;;  %v1587_v22 = vadd.f32 %v1571_v0, %v1534_v39 }
 0x36b   : > { %v1328_v61 = vadd.f32 %v1312_v24, %v1260_v11  ;;  %v1767_v26 = vmin.f32 %v1751_v51, 6.0  ;;  %v1415_v19 = vmul.f32 %v1550_v52, %v3685_v9  ;;  %v1416_v45 = vmul.f32 %v1551_v31, %v3685_v9  ;;  %v1553_v52 = vld [vmem:[#allocation2 + $0x12f] sm:$0xff] }
 0x36c   : > { %v1379_v63 = vadd.f32 %v1363_v27, %v1327_v3  ;;  %v1638_v21 = vadd.f32 %v1622_v4, %v1586_v5  ;;  %v1639_v18 = vadd.f32 %v1623_v6, %v1587_v22  ;;  %v1467_v32 = vmul.f32 %v1602_v1, %v3678_v62  ;;  %v1604_v31 = vld [vmem:[#allocation2 + $0x128] sm:$0xff]  ;;  %v1657_v4 = vld [vmem:[#allocation2 + $0x131] sm:$0xff] }
 0x36d   : > { %v1380_v53 = vadd.f32 %v1364_v47, %v1328_v61  ;;  %v2339_v38 = vpack.c.bf16 %v1767_v26, %v1766_v12  ;;  %v1468_v34 = vmul.f32 %v1603_v60, %v3678_v62  ;;  %v1519_v55 = vmul.f32 %v1654_v59, %v3688_v10  ;;  %v1656_v60 = vld [vmem:[#allocation2 + $0x129] sm:$0xff]  ;;  %v1772_v12 = vld [vmem:[#allocation17] sm:$0xf]  ;;  %v2558_v26 = vld [vmem:[%s3536_s10] sm:$0xf]  ;;  %s2875_s10 = sshll.u32 %s3038_s5, 4  ;;  %s2876_s10 = int_to_ptr.vmem [resolvable:$false] %s2875_s10 }
 0x36e   : > { %v1431_v20 = vadd.f32 %v1415_v19, %v1379_v63  ;;  %v1690_v56 = vadd.f32 %v1674_v7, %v1638_v21  ;;  %v1691_v29 = vadd.f32 %v1675_v8, %v1639_v18  ;;  %v1520_v49 = vmul.f32 %v1655_v54, %v3688_v10  ;;  %s2877_s15 = scalar_lea.vmem %s2876_s10, 128  ;;  %p2878_p5 = scmp.lt.s32.totalorder %s4130_s2, %s2876_s10 }
 0x36f   : > { %v1432_v15 = vadd.f32 %v1416_v45, %v1380_v53  ;;  %2341 = vmatpush3.bf16.xpose.msk.msra.mxu1 %vm3808_vm8, %v2339_v38  ;;  %v1572_v40 = vmul.f32 %v3696_v16, %v1552_v23  ;;  %v1573_v1 = vmul.f32 %v3696_v16, %v1553_v52  ;;  %v1624_v2 = vmul.f32 %v3699_v17, %v1604_v31  ;;  %p2879_p7 = scmp.lt.s32.totalorder %s2877_s15, %s2871_s12 }
 0x370   : > { %v1483_v9 = vadd.f32 %v1467_v32, %v1431_v20  ;;  %2342 = vmatprep.subr.bf16.mxu1 %v3035_v43  ;;  %v1714_v33 = vmul.f32 %v3760_v37, %v1690_v56  ;;  %v1715_v28 = vmul.f32 %v3760_v37, %v1691_v29  ;;  %v1625_v44 = vmul.f32 %v3699_v17, %v1605_v41 }
 0x371   : > { %v1484_v62 = vadd.f32 %v1468_v34, %v1432_v15  ;;  %v1676_v30 = vmul.f32 %v3717_v48, %v1656_v60  ;;  %v1677_v11 = vmul.f32 %v3717_v48, %v1657_v4  ;;  %p2880_p9 = por %p2879_p7, %p2878_p5 }
 0x372   : > { %v1535_v35 = vadd.f32 %v1519_v55, %v1483_v9  ;;  %v1736_v10 = vadd.f32 %v3766_v50, %v1714_v33  ;;  %v1737_v42 = vadd.f32 %v3766_v50, %v1715_v28 }
 0x373   : > { %v1536_v0 = vadd.f32 %v1520_v49, %v1484_v62  ;;  %p2881_p11 = pnand %p2880_p9, %p2874_p13 }
 0x374   : > { %v1588_v59 = vadd.f32 %v1572_v40, %v1535_v35  ;;  %v1752_v6 = vmax.f32 %v1736_v10, 0.0  ;;  %v1753_v54 = vmax.f32 %v1737_v42, 0.0 }
 0x375   : > { %v1589_v7 = vadd.f32 %v1573_v1, %v1536_v0 }
 0x376   : > { %v1640_v58 = vadd.f32 %v1624_v2, %v1588_v59  ;;  %v1768_v8 = vmin.f32 %v1752_v6, 6.0  ;;  %v1769_v57 = vmin.f32 %v1753_v54, 6.0 }
 0x377   : > { %v1641_v25 = vadd.f32 %v1625_v44, %v1589_v7 }
 0x378   : > { %v1692_v13 = vadd.f32 %v1676_v30, %v1640_v58  ;;  %v2343_v16 = vpack.c.bf16 %v1769_v57, %v1768_v8 }
 0x379   : > { %v1693_v14 = vadd.f32 %v1677_v11, %v1641_v25 }
 0x37a   : > { %v1716_v36 = vmul.f32 %v3760_v37, %v1692_v13  ;;  %2345 = vmatpush3.bf16.xpose.msk.msra.mxu1 %vm3808_vm8, %v2343_v16 }
 0x37b   : > { %v1717_v17 = vmul.f32 %v3760_v37, %v1693_v14  ;;  %2346 = vmatprep.subr.bf16.mxu1 %v3035_v43  ;;  %v1898_v43 = vpop.permute.xlu1 %1897 }
 0x37c   : > { %v1738_v39 = vadd.f32 %v3766_v50, %v1716_v36 }
 0x37d   : > { %v1739_v24 = vadd.f32 %v3766_v50, %v1717_v17  ;;  %v1905_v50 = vpop.permute.xlu0 %1904 }
 0x37e   : > { %v1754_v51 = vmax.f32 %v1738_v39, 0.0 }
 0x37f   : > { %v1755_v48 = vmax.f32 %v1739_v24, 0.0 }
 0x380   : > { %v1770_v3 = vmin.f32 %v1754_v51, 6.0 }
 0x381   : > { %v1771_v27 = vmin.f32 %v1755_v48, 6.0 }
 0x383   : > { %v2347_v47 = vpack.c.bf16 %v1771_v27, %v1770_v3 }
 0x385   : > { %2349 = vmatpush3.bf16.xpose.msk.msra.mxu1 %vm3808_vm8, %v2347_v47 }
 0x38c   : > { %2316 = vmatmul.mubr.msk.f32.vlgmr.msra.gmra.mrb[0].mxu1 %vm910_vm7, %v1772_v12 }
 0x45f   : > { %v1890_v37 = vpop.f32.mrb[0].mxu1 }
 0x460   : > { %v1900_v5 = vmul.f32 %v1898_v43, %v1890_v37  ;;  %v2317_v22 = vpop.f32.mrb[1].mxu1 }
 0x462   : > { %v1907_v61 = vadd.f32 %v1905_v50, %v1900_v5 }
 0x464   : > { %v1908_v46 = vadd.f32 %v2558_v26, %v1907_v61 }
 0x466   : > { %1909 = vst [vmem:[%s579_s9] sm:$0xf] %v1908_v46 }
 0x467   : > { %2884 = shalt.err (!%p2881_p11)
}
 0x468   : > { %s2885_s8 = scalar_lea.hbm %s4128_s19, 64  ;;  %s2889_s16 = scalar_lea.hbm %s4294_s13, 256 }
 0x469   : > { %p2886_p1 = scmp.ne.s32.totalorder %s4128_s19, %s2885_s8  ;;  %p2890_p2 = scmp.lt.u32.totalorder %s4128_s19, %s4294_s13 }
 0x46a   : > { %p2891_p4 = scmp.lt.u32.totalorder %s2889_s16, %s2885_s8  ;;  %p2893_p6 = scmp.lt.u32.totalorder %s2885_s8, %s4128_s19 }
 0x46b   : > { %p2887_p10 = pnand %p2886_p1, %p4295_p12 }
 0x46c   : > { %p2892_p3 = por %p2891_p4, %p2890_p2 }
 0x46d   : > { %p2888_p0 = pneg %p2887_p10 }
 0x46e   : > { %p2894_p8 = por %p2893_p6, %p2892_p3 }
 0x470   : > { %p2895_p13 = pnand %p2894_p8, %p2888_p0 }
 0x472   : > { %2898 = shalt.err (!%p2895_p13)
}
 0x473   : > { %2390 = dma.vmem_to_hbm [thread:$0]  (%p4295_p12), %s4130_s2, 64, %s4128_s19, %s1911_s29  }
 0x474 PF: > { %p2450_p5 = scmp.ge.s32.totalorder %s3017_s27, 2  ;;  %s1938_s24 = sand.u32 1, %s2989_s20  }
 0x475   : > { %p4296_p7 = scmp.ne.s32.totalorder %s4268_s23, 0  ;;  %s1939_s6 = scalar_lea.sflag [#allocation5], %s1938_s24 }
 0x477   : > { %p2428_p9 = pnand %p2450_p5, %p4296_p7 }
 0x479   : > { %2972 = dma.done.wait (!%p2428_p9), %s1939_s6, 64  }
 0x47a   : > { %2974 = vsyncadd (!%p2428_p9), %s1939_s6, 4294967232  ;;  %s34_s27 = sadd.s32 1, %s3017_s27   ;;  %s4297_s17 = sld [smem:[#allocation31_spill]] }
 0x47b   : > { %p31_p11 = scmp.ge.s32.totalorder %s34_s27, 6   ;;  %s4298_s18 = sld [smem:[#allocation32_spill]] }
 0x47c   : > { %s4299_s1 = sld [smem:[#allocation37_spill]]  ;;  %s4300_s9 = sld [smem:[#allocation38_spill]] }
 0x47d   : > { %s4301_s19 = smov %s3405_s0  ;;  %s4302_s20 = smov %s2993_s21 }
 0x47e   : > { %s4303_s21 = smov %s2997_s22  ;;  %s4304_s22 = smov %s3402_s4 }
 0x47f   : > { %s4305_s23 = smov %s3009_s25  ;;  %s4306_s24 = smov %s3013_s26 }
 0x480   :  { %33 = sbr.rel (!%p31_p11) target bundleno = 28 (0x1c), region = 161 }
 0x482   : > { %s4307_s25 = smov %s4299_s1  ;;  %s4308_s26 = smov %s4300_s9 }
 0x487   :  { %1944 = vsyncpa [#allocation4], 1 }
 0x488   :  { %1946 = vsyncpa [#allocation4 + $0x1], 1 }
 0x489   :  { %1947 = vsyncpa [#allocation7], 1 }
 0x48a   :  { %1949 = vsyncpa [#allocation7 + $0x1], 1 }
 0x48b   :  { %1950 = vsyncpa [#allocation10], 1 }
 0x48c   :  { %1951 = vsyncpa [#allocation13], 1 }
 0x48d   :  { %1952 = vsyncpa [#allocation16], 1 }
 0x48e   :  { %1953 = vsyncpa [#allocation19], 1 }
 0x48f   :  { %1954 = vsyncpa [#allocation5], 1 }
 0x490   :  { %1956 = vsyncpa [#allocation5 + $0x1], 1 }

</bundles_post_ra>
